<compile_context>
chip_gen: v7x
topology: tpu7x:2x2x1
jax: 0.10.0
libtpu: 0.0.40
codegen_flags: <defaults>
</compile_context>

<pallas_src>
import functools

import numpy as np
import jax
import jax.numpy as jnp
from jax.experimental import pallas as pl
from jax.experimental.pallas import tpu as pltpu


def _build_tap_tables(H, W):
    """Static per-tap lane shifts + zero-padding validity masks (host side)."""
    L = H * W
    lane = np.arange(L)
    w_idx = lane % W
    shifts = []
    masks = []
    for kh in range(3):
        for kw in range(3):
            dh, dw = kh - 1, kw - 1
            # out[l] needs in[l + dh*W + dw] (zero outside the image)
            shifts.append((-(dh * W + dw)) % L)
            valid = ((lane + dh * W >= 0) & (lane + dh * W < L) &   # 0 <= h+dh < H
                     (w_idx + dw >= 0) & (w_idx + dw < W))          # 0 <= w+dw < W
            masks.append(valid.astype(np.float32))
    return tuple(int(s) for s in shifts), np.stack(masks, axis=0)   # (9,), (9, L)


def _refine_kernel(x_ref, masks_ref,
                   w_in_ref, b_in_ref,
                   w_p1_ref, b_p1_ref,
                   w_p2_ref, b_p2_ref,
                   w_du1t_ref, b_du1_ref,
                   w_du2_ref, b_du2_ref,
                   w_last_ref, b_last_ref,
                   o_ref,
                   *, C, Cout, Cr, L, P, shifts):
    f32 = jnp.float32
    hi = jax.lax.Precision.HIGHEST

    masks = masks_ref[...]                     # (9, L) f32, loaded once per grid step

    def im2col(t):
        # t: (C, L). Returns (9*C, L); row index = tap*C + ci (matches weight layout).
        cols = []
        for tap, shift in enumerate(shifts):
            if shift == 0:                     # centre tap: no shift, mask == 1
                cols.append(t)
            else:
                cols.append(pltpu.roll(t, shift, 1) * masks[tap:tap + 1, :])
        return jnp.concatenate(cols, axis=0)

    def conv3x3(t, w_ref, b_ref, relu=False):
        # w_ref: (Cout_, 9*Cin) f32 VMEM, b_ref: (Cout_, 1) f32 VMEM.
        out = jnp.dot(w_ref[...], im2col(t),
                      preferred_element_type=f32, precision=hi) + b_ref[...]
        return jnp.maximum(out, 0.0) if relu else out

    w_du1t = w_du1t_ref[...]                   # (C, Cr)
    b_du1 = b_du1_ref[...]                     # (1, Cr)
    w_du2 = w_du2_ref[...]                     # (C, Cr)
    b_du2 = b_du2_ref[...]                     # (C, 1)
    inv_hw = 1.0 / float(L)

    outs = []
    for i in range(P):                         # P images packed into this block
        if P == 1:
            x = x_ref[...].astype(f32)                     # (C, L)
        else:
            x = x_ref[pl.ds(i * C, C), :].astype(f32)      # (C, L)

        # conv_in
        a = conv3x3(x, w_in_ref, b_in_ref)
        # CALayer.process: conv3x3 -> ReLU -> conv3x3
        u = conv3x3(a, w_p1_ref, b_p1_ref, relu=True)
        p = conv3x3(u, w_p2_ref, b_p2_ref)

        # Global average pool (one lane reduction) -> (C, 1)
        y = jnp.sum(p, axis=1, keepdims=True) * inv_hw
        # conv_du: 1x1 (C -> C//r) -> ReLU -> 1x1 (C//r -> C) -> sigmoid
        hid = jnp.maximum(
            jnp.sum(w_du1t * y, axis=0, keepdims=True) + b_du1, 0.0)        # (1, Cr)
        zpre = jnp.sum(w_du2 * hid, axis=1, keepdims=True) + b_du2          # (C, 1)
        z = 1.0 / (1.0 + jnp.exp(-zpre))                                    # sigmoid

        # CALayer output: z * y + x(=a), broadcast over the spatial lanes
        feat = a + z * y                                                    # (C, L)
        # conv_last
        outs.append(conv3x3(feat, w_last_ref, b_last_ref))                  # (Cout, L)

    if P == 1:
        o_ref[...] = outs[0].astype(o_ref.dtype)           # single full-tile store
    else:
        o_ref[...] = jnp.concatenate(outs, axis=0).astype(o_ref.dtype)


def refine_pallas(x, w_in, b_in, w_p1, b_p1, w_p2, b_p2,
                  w_du1, b_du1, w_du2, b_du2, w_last, b_last):
    """x: (N, C, H, W) f32.  3x3 conv weights in PyTorch OIHW (Cout, Cin, 3, 3);
    squeeze-excite weights as (C//r, C) and (C, C//r)."""
    N, C, H, W = x.shape
    Cout = w_last.shape[0]
    Cr = w_du1.shape[0]
    L = H * W
    f32 = jnp.float32

    # Pack 2 images per grid step only for larger even batches (fills sublanes and
    # halves grid steps on single-TC v5e/v6e); with N=2 keep 2 steps so both v7x
    # TensorCores get work.
    P = 2 if (N % 2 == 0 and N >= 4) else 1
    G = N // P

    shifts, masks_np = _build_tap_tables(H, W)
    masks = jnp.asarray(masks_np)                            # (9, L) f32

    x_flat = x.reshape(G, P * C, L)                          # free reshape, no transpose

    def w2d(w):  # OIHW (Co, Ci, 3, 3) -> (Co, 9*Ci), column index = (kh*3+kw)*Ci + ci
        co, ci = w.shape[0], w.shape[1]
        return jnp.transpose(w, (0, 2, 3, 1)).reshape(co, 9 * ci).astype(f32)

    col = lambda b: b.reshape(-1, 1).astype(f32)

    operands = (
        masks,
        w2d(w_in), col(b_in),
        w2d(w_p1), col(b_p1),
        w2d(w_p2), col(b_p2),
        jnp.transpose(w_du1).astype(f32),                    # (C, Cr)
        b_du1.reshape(1, Cr).astype(f32),                    # (1, Cr)
        w_du2.astype(f32),                                   # (C, Cr)
        b_du2.reshape(C, 1).astype(f32),                     # (C, 1)
        w2d(w_last), col(b_last),
    )

    def const_spec(a):
        nd = a.ndim
        return pl.BlockSpec(a.shape, lambda n, _nd=nd: (0,) * _nd)

    kernel = functools.partial(_refine_kernel, C=C, Cout=Cout, Cr=Cr, L=L, P=P,
                               shifts=shifts)

    out_flat = pl.pallas_call(
        kernel,
        out_shape=jax.ShapeDtypeStruct((G, P * Cout, L), x.dtype),
        grid_spec=pltpu.PrefetchScalarGridSpec(
            num_scalar_prefetch=0,
            grid=(G,),
            in_specs=[pl.BlockSpec((None, P * C, L), lambda n: (n, 0, 0))]
                     + [const_spec(a) for a in operands],
            out_specs=pl.BlockSpec((None, P * Cout, L), lambda n: (n, 0, 0)),
        ),
        compiler_params=pltpu.CompilerParams(
            dimension_semantics=("parallel",)),
    )(x_flat, *operands)

    return out_flat.reshape(N, Cout, H, W)


def refine_reference(x, w_in, b_in, w_p1, b_p1, w_p2, b_p2,
                     w_du1, b_du1, w_du2, b_du2, w_last, b_last):
    """Pure-JAX reference matching the PyTorch Refine.forward."""
    hi = jax.lax.Precision.HIGHEST

    def conv3(t, w, b):
        y = jax.lax.conv_general_dilated(
            t, w, window_strides=(1, 1), padding=((1, 1), (1, 1)),
            dimension_numbers=('NCHW', 'OIHW', 'NCHW'), precision=hi)
        return y + b[None, :, None, None]

    a = conv3(x, w_in, b_in)                                   # conv_in
    u = jax.nn.relu(conv3(a, w_p1, b_p1))                      # CALayer.process
    p = conv3(u, w_p2, b_p2)
    y = jnp.mean(p, axis=(2, 3), keepdims=True)                # avg_pool -> (N,C,1,1)
    h = jax.nn.relu(jnp.einsum('oc,ncij->noij', w_du1, y, precision=hi)
                    + b_du1[None, :, None, None])
    zz = jax.nn.sigmoid(jnp.einsum('oc,ncij->noij', w_du2, h, precision=hi)
                        + b_du2[None, :, None, None])
    bfeat = zz * y + a                                         # z * y + x
    return conv3(bfeat, w_last, b_last)                        # conv_last


if __name__ == "__main__":
    # Refine(n_feat=4, out_channel=4); CALayer reduction=4.
    N, C, H, W = 2, 4, 16, 16
    Cout = 4
    Cr = C // 4

    key = jax.random.PRNGKey(0)
    keys = jax.random.split(key, 13)

    def rnd(k, shape, scale=0.1):
        return scale * jax.random.normal(k, shape, dtype=jnp.float32)

    x = jax.random.normal(keys[0], (N, C, H, W), dtype=jnp.float32)
    w_in = rnd(keys[1], (C, C, 3, 3));      b_in = rnd(keys[2], (C,))
    w_p1 = rnd(keys[3], (C, C, 3, 3));      b_p1 = rnd(keys[4], (C,))
    w_p2 = rnd(keys[5], (C, C, 3, 3));      b_p2 = rnd(keys[6], (C,))
    w_du1 = rnd(keys[7], (Cr, C));          b_du1 = rnd(keys[8], (Cr,))
    w_du2 = rnd(keys[9], (C, Cr));          b_du2 = rnd(keys[10], (C,))
    w_last = rnd(keys[11], (Cout, C, 3, 3)); b_last = rnd(keys[12], (Cout,))

    out = refine_pallas(x, w_in, b_in, w_p1, b_p1, w_p2, b_p2,
                        w_du1, b_du1, w_du2, b_du2, w_last, b_last)
    out = jax.block_until_ready(out)

    ref = refine_reference(x, w_in, b_in, w_p1, b_p1, w_p2, b_p2,
                           w_du1, b_du1, w_du2, b_du2, w_last, b_last)

    assert out.shape == (N, Cout, H, W)
    assert jnp.allclose(out, ref, atol=1e-4, rtol=1e-4)

    print("KERNEL_OK")
</pallas_src>

<mosaic_0001>
module attributes {stable_mosaic.version = 11 : i64} {
  func.func @_refine_kernel(%arg0: i32, %arg1: memref<1x4x256xf32, #tpu.memory_space<vmem>>, %arg2: memref<9x256xf32, #tpu.memory_space<vmem>>, %arg3: memref<4x36xf32, #tpu.memory_space<vmem>>, %arg4: memref<4x1xf32, #tpu.memory_space<vmem>>, %arg5: memref<4x36xf32, #tpu.memory_space<vmem>>, %arg6: memref<4x1xf32, #tpu.memory_space<vmem>>, %arg7: memref<4x36xf32, #tpu.memory_space<vmem>>, %arg8: memref<4x1xf32, #tpu.memory_space<vmem>>, %arg9: memref<4x1xf32, #tpu.memory_space<vmem>>, %arg10: memref<1x1xf32, #tpu.memory_space<vmem>>, %arg11: memref<4x1xf32, #tpu.memory_space<vmem>>, %arg12: memref<4x1xf32, #tpu.memory_space<vmem>>, %arg13: memref<4x36xf32, #tpu.memory_space<vmem>>, %arg14: memref<4x1xf32, #tpu.memory_space<vmem>>, %arg15: memref<1x4x256xf32, #tpu.memory_space<vmem>>) attributes {dimension_semantics = [#tpu.dimension_semantics<parallel>], iteration_bounds = array<i64: 2>, scalar_prefetch = 0 : i64, scratch_operands = 0 : i64, tpu.core_type = #tpu.core_type<tc>, window_params = [{transform_indices = @transform_0, window_bounds = array<i64: 1, 4, 256>}, {pipeline_mode = #tpu.pipeline_mode<synchronous>, transform_indices = @transform_1, window_bounds = array<i64: 9, 256>}, {pipeline_mode = #tpu.pipeline_mode<synchronous>, transform_indices = @transform_2, window_bounds = array<i64: 4, 36>}, {pipeline_mode = #tpu.pipeline_mode<synchronous>, transform_indices = @transform_3, window_bounds = array<i64: 4, 1>}, {pipeline_mode = #tpu.pipeline_mode<synchronous>, transform_indices = @transform_4, window_bounds = array<i64: 4, 36>}, {pipeline_mode = #tpu.pipeline_mode<synchronous>, transform_indices = @transform_5, window_bounds = array<i64: 4, 1>}, {pipeline_mode = #tpu.pipeline_mode<synchronous>, transform_indices = @transform_6, window_bounds = array<i64: 4, 36>}, {pipeline_mode = #tpu.pipeline_mode<synchronous>, transform_indices = @transform_7, window_bounds = array<i64: 4, 1>}, {pipeline_mode = #tpu.pipeline_mode<synchronous>, transform_indices = @transform_8, window_bounds = array<i64: 4, 1>}, {pipeline_mode = #tpu.pipeline_mode<synchronous>, transform_indices = @transform_9, window_bounds = array<i64: 1, 1>}, {pipeline_mode = #tpu.pipeline_mode<synchronous>, transform_indices = @transform_10, window_bounds = array<i64: 4, 1>}, {pipeline_mode = #tpu.pipeline_mode<synchronous>, transform_indices = @transform_11, window_bounds = array<i64: 4, 1>}, {pipeline_mode = #tpu.pipeline_mode<synchronous>, transform_indices = @transform_12, window_bounds = array<i64: 4, 36>}, {pipeline_mode = #tpu.pipeline_mode<synchronous>, transform_indices = @transform_13, window_bounds = array<i64: 4, 1>}, {transform_indices = @transform_14, window_bounds = array<i64: 1, 4, 256>}]} {
    %c0 = arith.constant 0 : index
    %c0_0 = arith.constant 0 : index
    %0 = vector.load %arg2[%c0, %c0_0] : memref<9x256xf32, #tpu.memory_space<vmem>>, vector<9x256xf32>
    %c0_1 = arith.constant 0 : index
    %c0_2 = arith.constant 0 : index
    %1 = vector.load %arg9[%c0_1, %c0_2] : memref<4x1xf32, #tpu.memory_space<vmem>>, vector<4x1xf32>
    %c0_3 = arith.constant 0 : index
    %c0_4 = arith.constant 0 : index
    %2 = vector.load %arg10[%c0_3, %c0_4] : memref<1x1xf32, #tpu.memory_space<vmem>>, vector<1x1xf32>
    %c0_5 = arith.constant 0 : index
    %c0_6 = arith.constant 0 : index
    %3 = vector.load %arg11[%c0_5, %c0_6] : memref<4x1xf32, #tpu.memory_space<vmem>>, vector<4x1xf32>
    %c0_7 = arith.constant 0 : index
    %c0_8 = arith.constant 0 : index
    %4 = vector.load %arg12[%c0_7, %c0_8] : memref<4x1xf32, #tpu.memory_space<vmem>>, vector<4x1xf32>
    %c0_9 = arith.constant 0 : index
    %c0_10 = arith.constant 0 : index
    %c0_11 = arith.constant 0 : index
    %5 = vector.load %arg1[%c0_9, %c0_10, %c0_11] : memref<1x4x256xf32, #tpu.memory_space<vmem>>, vector<1x4x256xf32>
    %6 = vector.shape_cast %5 : vector<1x4x256xf32> to vector<4x256xf32>
    %c0_12 = arith.constant 0 : index
    %c0_13 = arith.constant 0 : index
    %7 = vector.load %arg3[%c0_12, %c0_13] : memref<4x36xf32, #tpu.memory_space<vmem>>, vector<4x36xf32>
    %c17_i32 = arith.constant 17 : i32
    %8 = tpu.dynamic_rotate %6 by %c17_i32 dim 1 : vector<4x256xf32>, i32 -> vector<4x256xf32>
    %9 = vector.extract_strided_slice %0 {offsets = [0, 0], sizes = [1, 256], strides = [1, 1]} : vector<9x256xf32> to vector<1x256xf32>
    %10 = vector.broadcast %9 : vector<1x256xf32> to vector<4x256xf32>
    %11 = arith.mulf %8, %10 : vector<4x256xf32>
    %c16_i32 = arith.constant 16 : i32
    %12 = tpu.dynamic_rotate %6 by %c16_i32 dim 1 : vector<4x256xf32>, i32 -> vector<4x256xf32>
    %13 = vector.extract_strided_slice %0 {offsets = [1, 0], sizes = [1, 256], strides = [1, 1]} : vector<9x256xf32> to vector<1x256xf32>
    %14 = vector.broadcast %13 : vector<1x256xf32> to vector<4x256xf32>
    %15 = arith.mulf %12, %14 : vector<4x256xf32>
    %c15_i32 = arith.constant 15 : i32
    %16 = tpu.dynamic_rotate %6 by %c15_i32 dim 1 : vector<4x256xf32>, i32 -> vector<4x256xf32>
    %17 = vector.extract_strided_slice %0 {offsets = [2, 0], sizes = [1, 256], strides = [1, 1]} : vector<9x256xf32> to vector<1x256xf32>
    %18 = vector.broadcast %17 : vector<1x256xf32> to vector<4x256xf32>
    %19 = arith.mulf %16, %18 : vector<4x256xf32>
    %c1_i32 = arith.constant 1 : i32
    %20 = tpu.dynamic_rotate %6 by %c1_i32 dim 1 : vector<4x256xf32>, i32 -> vector<4x256xf32>
    %21 = vector.extract_strided_slice %0 {offsets = [3, 0], sizes = [1, 256], strides = [1, 1]} : vector<9x256xf32> to vector<1x256xf32>
    %22 = vector.broadcast %21 : vector<1x256xf32> to vector<4x256xf32>
    %23 = arith.mulf %20, %22 : vector<4x256xf32>
    %c255_i32 = arith.constant 255 : i32
    %24 = tpu.dynamic_rotate %6 by %c255_i32 dim 1 : vector<4x256xf32>, i32 -> vector<4x256xf32>
    %25 = vector.extract_strided_slice %0 {offsets = [5, 0], sizes = [1, 256], strides = [1, 1]} : vector<9x256xf32> to vector<1x256xf32>
    %26 = vector.broadcast %25 : vector<1x256xf32> to vector<4x256xf32>
    %27 = arith.mulf %24, %26 : vector<4x256xf32>
    %c241_i32 = arith.constant 241 : i32
    %28 = tpu.dynamic_rotate %6 by %c241_i32 dim 1 : vector<4x256xf32>, i32 -> vector<4x256xf32>
    %29 = vector.extract_strided_slice %0 {offsets = [6, 0], sizes = [1, 256], strides = [1, 1]} : vector<9x256xf32> to vector<1x256xf32>
    %30 = vector.broadcast %29 : vector<1x256xf32> to vector<4x256xf32>
    %31 = arith.mulf %28, %30 : vector<4x256xf32>
    %c240_i32 = arith.constant 240 : i32
    %32 = tpu.dynamic_rotate %6 by %c240_i32 dim 1 : vector<4x256xf32>, i32 -> vector<4x256xf32>
    %33 = vector.extract_strided_slice %0 {offsets = [7, 0], sizes = [1, 256], strides = [1, 1]} : vector<9x256xf32> to vector<1x256xf32>
    %34 = vector.broadcast %33 : vector<1x256xf32> to vector<4x256xf32>
    %35 = arith.mulf %32, %34 : vector<4x256xf32>
    %c239_i32 = arith.constant 239 : i32
    %36 = tpu.dynamic_rotate %6 by %c239_i32 dim 1 : vector<4x256xf32>, i32 -> vector<4x256xf32>
    %37 = vector.extract_strided_slice %0 {offsets = [8, 0], sizes = [1, 256], strides = [1, 1]} : vector<9x256xf32> to vector<1x256xf32>
    %38 = vector.broadcast %37 : vector<1x256xf32> to vector<4x256xf32>
    %39 = arith.mulf %36, %38 : vector<4x256xf32>
    %40 = tpu.concatenate %11, %15, %19, %23, %6, %27, %31, %35, %39 in 0 : vector<4x256xf32>, vector<4x256xf32>, vector<4x256xf32>, vector<4x256xf32>, vector<4x256xf32>, vector<4x256xf32>, vector<4x256xf32>, vector<4x256xf32>, vector<4x256xf32> -> vector<36x256xf32>
    %cst = arith.constant dense<0.000000e+00> : vector<4x256xf32>
    %41 = tpu.matmul %7, %40, %cst {dimension_numbers = #tpu.dot_dimension_numbers<[1], [0], [0], [1], [0, 0, 1, 1], [], []>, precision = #tpu.contract_precision<fp32>} : vector<4x36xf32>, vector<36x256xf32>, vector<4x256xf32> -> vector<4x256xf32>
    %c0_14 = arith.constant 0 : index
    %c0_15 = arith.constant 0 : index
    %42 = vector.load %arg4[%c0_14, %c0_15] : memref<4x1xf32, #tpu.memory_space<vmem>>, vector<4x1xf32>
    %43 = vector.broadcast %42 : vector<4x1xf32> to vector<4x256xf32>
    %44 = arith.addf %41, %43 : vector<4x256xf32>
    %c0_16 = arith.constant 0 : index
    %c0_17 = arith.constant 0 : index
    %45 = vector.load %arg5[%c0_16, %c0_17] : memref<4x36xf32, #tpu.memory_space<vmem>>, vector<4x36xf32>
    %c17_i32_18 = arith.constant 17 : i32
    %46 = tpu.dynamic_rotate %44 by %c17_i32_18 dim 1 : vector<4x256xf32>, i32 -> vector<4x256xf32>
    %47 = vector.extract_strided_slice %0 {offsets = [0, 0], sizes = [1, 256], strides = [1, 1]} : vector<9x256xf32> to vector<1x256xf32>
    %48 = vector.broadcast %47 : vector<1x256xf32> to vector<4x256xf32>
    %49 = arith.mulf %46, %48 : vector<4x256xf32>
    %c16_i32_19 = arith.constant 16 : i32
    %50 = tpu.dynamic_rotate %44 by %c16_i32_19 dim 1 : vector<4x256xf32>, i32 -> vector<4x256xf32>
    %51 = vector.extract_strided_slice %0 {offsets = [1, 0], sizes = [1, 256], strides = [1, 1]} : vector<9x256xf32> to vector<1x256xf32>
    %52 = vector.broadcast %51 : vector<1x256xf32> to vector<4x256xf32>
    %53 = arith.mulf %50, %52 : vector<4x256xf32>
    %c15_i32_20 = arith.constant 15 : i32
    %54 = tpu.dynamic_rotate %44 by %c15_i32_20 dim 1 : vector<4x256xf32>, i32 -> vector<4x256xf32>
    %55 = vector.extract_strided_slice %0 {offsets = [2, 0], sizes = [1, 256], strides = [1, 1]} : vector<9x256xf32> to vector<1x256xf32>
    %56 = vector.broadcast %55 : vector<1x256xf32> to vector<4x256xf32>
    %57 = arith.mulf %54, %56 : vector<4x256xf32>
    %c1_i32_21 = arith.constant 1 : i32
    %58 = tpu.dynamic_rotate %44 by %c1_i32_21 dim 1 : vector<4x256xf32>, i32 -> vector<4x256xf32>
    %59 = vector.extract_strided_slice %0 {offsets = [3, 0], sizes = [1, 256], strides = [1, 1]} : vector<9x256xf32> to vector<1x256xf32>
    %60 = vector.broadcast %59 : vector<1x256xf32> to vector<4x256xf32>
    %61 = arith.mulf %58, %60 : vector<4x256xf32>
    %c255_i32_22 = arith.constant 255 : i32
    %62 = tpu.dynamic_rotate %44 by %c255_i32_22 dim 1 : vector<4x256xf32>, i32 -> vector<4x256xf32>
    %63 = vector.extract_strided_slice %0 {offsets = [5, 0], sizes = [1, 256], strides = [1, 1]} : vector<9x256xf32> to vector<1x256xf32>
    %64 = vector.broadcast %63 : vector<1x256xf32> to vector<4x256xf32>
    %65 = arith.mulf %62, %64 : vector<4x256xf32>
    %c241_i32_23 = arith.constant 241 : i32
    %66 = tpu.dynamic_rotate %44 by %c241_i32_23 dim 1 : vector<4x256xf32>, i32 -> vector<4x256xf32>
    %67 = vector.extract_strided_slice %0 {offsets = [6, 0], sizes = [1, 256], strides = [1, 1]} : vector<9x256xf32> to vector<1x256xf32>
    %68 = vector.broadcast %67 : vector<1x256xf32> to vector<4x256xf32>
    %69 = arith.mulf %66, %68 : vector<4x256xf32>
    %c240_i32_24 = arith.constant 240 : i32
    %70 = tpu.dynamic_rotate %44 by %c240_i32_24 dim 1 : vector<4x256xf32>, i32 -> vector<4x256xf32>
    %71 = vector.extract_strided_slice %0 {offsets = [7, 0], sizes = [1, 256], strides = [1, 1]} : vector<9x256xf32> to vector<1x256xf32>
    %72 = vector.broadcast %71 : vector<1x256xf32> to vector<4x256xf32>
    %73 = arith.mulf %70, %72 : vector<4x256xf32>
    %c239_i32_25 = arith.constant 239 : i32
    %74 = tpu.dynamic_rotate %44 by %c239_i32_25 dim 1 : vector<4x256xf32>, i32 -> vector<4x256xf32>
    %75 = vector.extract_strided_slice %0 {offsets = [8, 0], sizes = [1, 256], strides = [1, 1]} : vector<9x256xf32> to vector<1x256xf32>
    %76 = vector.broadcast %75 : vector<1x256xf32> to vector<4x256xf32>
    %77 = arith.mulf %74, %76 : vector<4x256xf32>
    %78 = tpu.concatenate %49, %53, %57, %61, %44, %65, %69, %73, %77 in 0 : vector<4x256xf32>, vector<4x256xf32>, vector<4x256xf32>, vector<4x256xf32>, vector<4x256xf32>, vector<4x256xf32>, vector<4x256xf32>, vector<4x256xf32>, vector<4x256xf32> -> vector<36x256xf32>
    %cst_26 = arith.constant dense<0.000000e+00> : vector<4x256xf32>
    %79 = tpu.matmul %45, %78, %cst_26 {dimension_numbers = #tpu.dot_dimension_numbers<[1], [0], [0], [1], [0, 0, 1, 1], [], []>, precision = #tpu.contract_precision<fp32>} : vector<4x36xf32>, vector<36x256xf32>, vector<4x256xf32> -> vector<4x256xf32>
    %c0_27 = arith.constant 0 : index
    %c0_28 = arith.constant 0 : index
    %80 = vector.load %arg6[%c0_27, %c0_28] : memref<4x1xf32, #tpu.memory_space<vmem>>, vector<4x1xf32>
    %81 = vector.broadcast %80 : vector<4x1xf32> to vector<4x256xf32>
    %82 = arith.addf %79, %81 : vector<4x256xf32>
    %cst_29 = arith.constant 0.000000e+00 : f32
    %83 = vector.broadcast %cst_29 : f32 to vector<4x256xf32>
    %84 = arith.maximumf %82, %83 : vector<4x256xf32>
    %c0_30 = arith.constant 0 : index
    %c0_31 = arith.constant 0 : index
    %85 = vector.load %arg7[%c0_30, %c0_31] : memref<4x36xf32, #tpu.memory_space<vmem>>, vector<4x36xf32>
    %c17_i32_32 = arith.constant 17 : i32
    %86 = tpu.dynamic_rotate %84 by %c17_i32_32 dim 1 : vector<4x256xf32>, i32 -> vector<4x256xf32>
    %87 = vector.extract_strided_slice %0 {offsets = [0, 0], sizes = [1, 256], strides = [1, 1]} : vector<9x256xf32> to vector<1x256xf32>
    %88 = vector.broadcast %87 : vector<1x256xf32> to vector<4x256xf32>
    %89 = arith.mulf %86, %88 : vector<4x256xf32>
    %c16_i32_33 = arith.constant 16 : i32
    %90 = tpu.dynamic_rotate %84 by %c16_i32_33 dim 1 : vector<4x256xf32>, i32 -> vector<4x256xf32>
    %91 = vector.extract_strided_slice %0 {offsets = [1, 0], sizes = [1, 256], strides = [1, 1]} : vector<9x256xf32> to vector<1x256xf32>
    %92 = vector.broadcast %91 : vector<1x256xf32> to vector<4x256xf32>
    %93 = arith.mulf %90, %92 : vector<4x256xf32>
    %c15_i32_34 = arith.constant 15 : i32
    %94 = tpu.dynamic_rotate %84 by %c15_i32_34 dim 1 : vector<4x256xf32>, i32 -> vector<4x256xf32>
    %95 = vector.extract_strided_slice %0 {offsets = [2, 0], sizes = [1, 256], strides = [1, 1]} : vector<9x256xf32> to vector<1x256xf32>
    %96 = vector.broadcast %95 : vector<1x256xf32> to vector<4x256xf32>
    %97 = arith.mulf %94, %96 : vector<4x256xf32>
    %c1_i32_35 = arith.constant 1 : i32
    %98 = tpu.dynamic_rotate %84 by %c1_i32_35 dim 1 : vector<4x256xf32>, i32 -> vector<4x256xf32>
    %99 = vector.extract_strided_slice %0 {offsets = [3, 0], sizes = [1, 256], strides = [1, 1]} : vector<9x256xf32> to vector<1x256xf32>
    %100 = vector.broadcast %99 : vector<1x256xf32> to vector<4x256xf32>
    %101 = arith.mulf %98, %100 : vector<4x256xf32>
    %c255_i32_36 = arith.constant 255 : i32
    %102 = tpu.dynamic_rotate %84 by %c255_i32_36 dim 1 : vector<4x256xf32>, i32 -> vector<4x256xf32>
    %103 = vector.extract_strided_slice %0 {offsets = [5, 0], sizes = [1, 256], strides = [1, 1]} : vector<9x256xf32> to vector<1x256xf32>
    %104 = vector.broadcast %103 : vector<1x256xf32> to vector<4x256xf32>
    %105 = arith.mulf %102, %104 : vector<4x256xf32>
    %c241_i32_37 = arith.constant 241 : i32
    %106 = tpu.dynamic_rotate %84 by %c241_i32_37 dim 1 : vector<4x256xf32>, i32 -> vector<4x256xf32>
    %107 = vector.extract_strided_slice %0 {offsets = [6, 0], sizes = [1, 256], strides = [1, 1]} : vector<9x256xf32> to vector<1x256xf32>
    %108 = vector.broadcast %107 : vector<1x256xf32> to vector<4x256xf32>
    %109 = arith.mulf %106, %108 : vector<4x256xf32>
    %c240_i32_38 = arith.constant 240 : i32
    %110 = tpu.dynamic_rotate %84 by %c240_i32_38 dim 1 : vector<4x256xf32>, i32 -> vector<4x256xf32>
    %111 = vector.extract_strided_slice %0 {offsets = [7, 0], sizes = [1, 256], strides = [1, 1]} : vector<9x256xf32> to vector<1x256xf32>
    %112 = vector.broadcast %111 : vector<1x256xf32> to vector<4x256xf32>
    %113 = arith.mulf %110, %112 : vector<4x256xf32>
    %c239_i32_39 = arith.constant 239 : i32
    %114 = tpu.dynamic_rotate %84 by %c239_i32_39 dim 1 : vector<4x256xf32>, i32 -> vector<4x256xf32>
    %115 = vector.extract_strided_slice %0 {offsets = [8, 0], sizes = [1, 256], strides = [1, 1]} : vector<9x256xf32> to vector<1x256xf32>
    %116 = vector.broadcast %115 : vector<1x256xf32> to vector<4x256xf32>
    %117 = arith.mulf %114, %116 : vector<4x256xf32>
    %118 = tpu.concatenate %89, %93, %97, %101, %84, %105, %109, %113, %117 in 0 : vector<4x256xf32>, vector<4x256xf32>, vector<4x256xf32>, vector<4x256xf32>, vector<4x256xf32>, vector<4x256xf32>, vector<4x256xf32>, vector<4x256xf32>, vector<4x256xf32> -> vector<36x256xf32>
    %cst_40 = arith.constant dense<0.000000e+00> : vector<4x256xf32>
    %119 = tpu.matmul %85, %118, %cst_40 {dimension_numbers = #tpu.dot_dimension_numbers<[1], [0], [0], [1], [0, 0, 1, 1], [], []>, precision = #tpu.contract_precision<fp32>} : vector<4x36xf32>, vector<36x256xf32>, vector<4x256xf32> -> vector<4x256xf32>
    %c0_41 = arith.constant 0 : index
    %c0_42 = arith.constant 0 : index
    %120 = vector.load %arg8[%c0_41, %c0_42] : memref<4x1xf32, #tpu.memory_space<vmem>>, vector<4x1xf32>
    %121 = vector.broadcast %120 : vector<4x1xf32> to vector<4x256xf32>
    %122 = arith.addf %119, %121 : vector<4x256xf32>
    %cst_43 = arith.constant dense<0.000000e+00> : vector<4xf32>
    %123 = vector.multi_reduction <add>, %122, %cst_43 [1] : vector<4x256xf32> to vector<4xf32>
    %124 = vector.shape_cast %123 : vector<4xf32> to vector<4x1xf32>
    %cst_44 = arith.constant 3.906250e-03 : f32
    %125 = vector.broadcast %cst_44 : f32 to vector<4x1xf32>
    %126 = arith.mulf %124, %125 : vector<4x1xf32>
    %127 = arith.mulf %1, %126 : vector<4x1xf32>
    %cst_45 = arith.constant dense<0.000000e+00> : vector<1xf32>
    %128 = vector.multi_reduction <add>, %127, %cst_45 [0] : vector<4x1xf32> to vector<1xf32>
    %129 = vector.shape_cast %128 : vector<1xf32> to vector<1x1xf32>
    %130 = arith.addf %129, %2 : vector<1x1xf32>
    %cst_46 = arith.constant 0.000000e+00 : f32
    %131 = vector.broadcast %cst_46 : f32 to vector<1x1xf32>
    %132 = arith.maximumf %130, %131 : vector<1x1xf32>
    %133 = vector.broadcast %132 : vector<1x1xf32> to vector<4x1xf32>
    %134 = arith.mulf %3, %133 : vector<4x1xf32>
    %cst_47 = arith.constant dense<0.000000e+00> : vector<4xf32>
    %135 = vector.multi_reduction <add>, %134, %cst_47 [1] : vector<4x1xf32> to vector<4xf32>
    %136 = vector.shape_cast %135 : vector<4xf32> to vector<4x1xf32>
    %137 = arith.addf %136, %4 : vector<4x1xf32>
    %cst_48 = arith.constant 0.000000e+00 : f32
    %138 = vector.broadcast %cst_48 : f32 to vector<4x1xf32>
    %139 = arith.subf %138, %137 : vector<4x1xf32>
    %140 = math.exp %139 : vector<4x1xf32>
    %cst_49 = arith.constant 1.000000e+00 : f32
    %141 = vector.broadcast %cst_49 : f32 to vector<4x1xf32>
    %142 = arith.addf %141, %140 : vector<4x1xf32>
    %cst_50 = arith.constant 1.000000e+00 : f32
    %143 = vector.broadcast %cst_50 : f32 to vector<4x1xf32>
    %144 = arith.divf %143, %142 : vector<4x1xf32>
    %145 = arith.mulf %144, %126 : vector<4x1xf32>
    %146 = vector.broadcast %145 : vector<4x1xf32> to vector<4x256xf32>
    %147 = arith.addf %44, %146 : vector<4x256xf32>
    %c0_51 = arith.constant 0 : index
    %c0_52 = arith.constant 0 : index
    %148 = vector.load %arg13[%c0_51, %c0_52] : memref<4x36xf32, #tpu.memory_space<vmem>>, vector<4x36xf32>
    %c17_i32_53 = arith.constant 17 : i32
    %149 = tpu.dynamic_rotate %147 by %c17_i32_53 dim 1 : vector<4x256xf32>, i32 -> vector<4x256xf32>
    %150 = vector.extract_strided_slice %0 {offsets = [0, 0], sizes = [1, 256], strides = [1, 1]} : vector<9x256xf32> to vector<1x256xf32>
    %151 = vector.broadcast %150 : vector<1x256xf32> to vector<4x256xf32>
    %152 = arith.mulf %149, %151 : vector<4x256xf32>
    %c16_i32_54 = arith.constant 16 : i32
    %153 = tpu.dynamic_rotate %147 by %c16_i32_54 dim 1 : vector<4x256xf32>, i32 -> vector<4x256xf32>
    %154 = vector.extract_strided_slice %0 {offsets = [1, 0], sizes = [1, 256], strides = [1, 1]} : vector<9x256xf32> to vector<1x256xf32>
    %155 = vector.broadcast %154 : vector<1x256xf32> to vector<4x256xf32>
    %156 = arith.mulf %153, %155 : vector<4x256xf32>
    %c15_i32_55 = arith.constant 15 : i32
    %157 = tpu.dynamic_rotate %147 by %c15_i32_55 dim 1 : vector<4x256xf32>, i32 -> vector<4x256xf32>
    %158 = vector.extract_strided_slice %0 {offsets = [2, 0], sizes = [1, 256], strides = [1, 1]} : vector<9x256xf32> to vector<1x256xf32>
    %159 = vector.broadcast %158 : vector<1x256xf32> to vector<4x256xf32>
    %160 = arith.mulf %157, %159 : vector<4x256xf32>
    %c1_i32_56 = arith.constant 1 : i32
    %161 = tpu.dynamic_rotate %147 by %c1_i32_56 dim 1 : vector<4x256xf32>, i32 -> vector<4x256xf32>
    %162 = vector.extract_strided_slice %0 {offsets = [3, 0], sizes = [1, 256], strides = [1, 1]} : vector<9x256xf32> to vector<1x256xf32>
    %163 = vector.broadcast %162 : vector<1x256xf32> to vector<4x256xf32>
    %164 = arith.mulf %161, %163 : vector<4x256xf32>
    %c255_i32_57 = arith.constant 255 : i32
    %165 = tpu.dynamic_rotate %147 by %c255_i32_57 dim 1 : vector<4x256xf32>, i32 -> vector<4x256xf32>
    %166 = vector.extract_strided_slice %0 {offsets = [5, 0], sizes = [1, 256], strides = [1, 1]} : vector<9x256xf32> to vector<1x256xf32>
    %167 = vector.broadcast %166 : vector<1x256xf32> to vector<4x256xf32>
    %168 = arith.mulf %165, %167 : vector<4x256xf32>
    %c241_i32_58 = arith.constant 241 : i32
    %169 = tpu.dynamic_rotate %147 by %c241_i32_58 dim 1 : vector<4x256xf32>, i32 -> vector<4x256xf32>
    %170 = vector.extract_strided_slice %0 {offsets = [6, 0], sizes = [1, 256], strides = [1, 1]} : vector<9x256xf32> to vector<1x256xf32>
    %171 = vector.broadcast %170 : vector<1x256xf32> to vector<4x256xf32>
    %172 = arith.mulf %169, %171 : vector<4x256xf32>
    %c240_i32_59 = arith.constant 240 : i32
    %173 = tpu.dynamic_rotate %147 by %c240_i32_59 dim 1 : vector<4x256xf32>, i32 -> vector<4x256xf32>
    %174 = vector.extract_strided_slice %0 {offsets = [7, 0], sizes = [1, 256], strides = [1, 1]} : vector<9x256xf32> to vector<1x256xf32>
    %175 = vector.broadcast %174 : vector<1x256xf32> to vector<4x256xf32>
    %176 = arith.mulf %173, %175 : vector<4x256xf32>
    %c239_i32_60 = arith.constant 239 : i32
    %177 = tpu.dynamic_rotate %147 by %c239_i32_60 dim 1 : vector<4x256xf32>, i32 -> vector<4x256xf32>
    %178 = vector.extract_strided_slice %0 {offsets = [8, 0], sizes = [1, 256], strides = [1, 1]} : vector<9x256xf32> to vector<1x256xf32>
    %179 = vector.broadcast %178 : vector<1x256xf32> to vector<4x256xf32>
    %180 = arith.mulf %177, %179 : vector<4x256xf32>
    %181 = tpu.concatenate %152, %156, %160, %164, %147, %168, %172, %176, %180 in 0 : vector<4x256xf32>, vector<4x256xf32>, vector<4x256xf32>, vector<4x256xf32>, vector<4x256xf32>, vector<4x256xf32>, vector<4x256xf32>, vector<4x256xf32>, vector<4x256xf32> -> vector<36x256xf32>
    %cst_61 = arith.constant dense<0.000000e+00> : vector<4x256xf32>
    %182 = tpu.matmul %148, %181, %cst_61 {dimension_numbers = #tpu.dot_dimension_numbers<[1], [0], [0], [1], [0, 0, 1, 1], [], []>, precision = #tpu.contract_precision<fp32>} : vector<4x36xf32>, vector<36x256xf32>, vector<4x256xf32> -> vector<4x256xf32>
    %c0_62 = arith.constant 0 : index
    %c0_63 = arith.constant 0 : index
    %183 = vector.load %arg14[%c0_62, %c0_63] : memref<4x1xf32, #tpu.memory_space<vmem>>, vector<4x1xf32>
    %184 = vector.broadcast %183 : vector<4x1xf32> to vector<4x256xf32>
    %185 = arith.addf %182, %184 : vector<4x256xf32>
    %c0_64 = arith.constant 0 : index
    %c0_65 = arith.constant 0 : index
    %c0_66 = arith.constant 0 : index
    %186 = vector.load %arg15[%c0_64, %c0_65, %c0_66] : memref<1x4x256xf32, #tpu.memory_space<vmem>>, vector<1x4x256xf32>
    %187 = vector.shape_cast %186 : vector<1x4x256xf32> to vector<4x256xf32>
    %188 = vector.shape_cast %185 : vector<4x256xf32> to vector<1x4x256xf32>
    tpu.vector_store %arg15[%c0_64, %c0_65, %c0_66], %188 {strides = array<i32>} : memref<1x4x256xf32, #tpu.memory_space<vmem>>, vector<1x4x256xf32>,
    return
  }
  func.func @transform_0(%arg0: i32) -> (i32, i32, i32) {
    %c0_i32 = arith.constant 0 : i32
    %c0_i32_0 = arith.constant 0 : i32
    %c0_i32_1 = arith.constant 0 : i32
    return %arg0, %c0_i32, %c0_i32_0 : i32, i32, i32
  }
  func.func @transform_1(%arg0: i32) -> (i32, i32) {
    %c0_i32 = arith.constant 0 : i32
    %c0_i32_0 = arith.constant 0 : i32
    %c0_i32_1 = arith.constant 0 : i32
    return %c0_i32, %c0_i32_0 : i32, i32
  }
  func.func @transform_2(%arg0: i32) -> (i32, i32) {
    %c0_i32 = arith.constant 0 : i32
    %c0_i32_0 = arith.constant 0 : i32
    %c0_i32_1 = arith.constant 0 : i32
    return %c0_i32, %c0_i32_0 : i32, i32
  }
  func.func @transform_3(%arg0: i32) -> (i32, i32) {
    %c0_i32 = arith.constant 0 : i32
    %c0_i32_0 = arith.constant 0 : i32
    %c0_i32_1 = arith.constant 0 : i32
    return %c0_i32, %c0_i32_0 : i32, i32
  }
  func.func @transform_4(%arg0: i32) -> (i32, i32) {
    %c0_i32 = arith.constant 0 : i32
    %c0_i32_0 = arith.constant 0 : i32
    %c0_i32_1 = arith.constant 0 : i32
    return %c0_i32, %c0_i32_0 : i32, i32
  }
  func.func @transform_5(%arg0: i32) -> (i32, i32) {
    %c0_i32 = arith.constant 0 : i32
    %c0_i32_0 = arith.constant 0 : i32
    %c0_i32_1 = arith.constant 0 : i32
    return %c0_i32, %c0_i32_0 : i32, i32
  }
  func.func @transform_6(%arg0: i32) -> (i32, i32) {
    %c0_i32 = arith.constant 0 : i32
    %c0_i32_0 = arith.constant 0 : i32
    %c0_i32_1 = arith.constant 0 : i32
    return %c0_i32, %c0_i32_0 : i32, i32
  }
  func.func @transform_7(%arg0: i32) -> (i32, i32) {
    %c0_i32 = arith.constant 0 : i32
    %c0_i32_0 = arith.constant 0 : i32
    %c0_i32_1 = arith.constant 0 : i32
    return %c0_i32, %c0_i32_0 : i32, i32
  }
  func.func @transform_8(%arg0: i32) -> (i32, i32) {
    %c0_i32 = arith.constant 0 : i32
    %c0_i32_0 = arith.constant 0 : i32
    %c0_i32_1 = arith.constant 0 : i32
    return %c0_i32, %c0_i32_0 : i32, i32
  }
  func.func @transform_9(%arg0: i32) -> (i32, i32) {
    %c0_i32 = arith.constant 0 : i32
    %c0_i32_0 = arith.constant 0 : i32
    %c0_i32_1 = arith.constant 0 : i32
    return %c0_i32, %c0_i32_0 : i32, i32
  }
  func.func @transform_10(%arg0: i32) -> (i32, i32) {
    %c0_i32 = arith.constant 0 : i32
    %c0_i32_0 = arith.constant 0 : i32
    %c0_i32_1 = arith.constant 0 : i32
    return %c0_i32, %c0_i32_0 : i32, i32
  }
  func.func @transform_11(%arg0: i32) -> (i32, i32) {
    %c0_i32 = arith.constant 0 : i32
    %c0_i32_0 = arith.constant 0 : i32
    %c0_i32_1 = arith.constant 0 : i32
    return %c0_i32, %c0_i32_0 : i32, i32
  }
  func.func @transform_12(%arg0: i32) -> (i32, i32) {
    %c0_i32 = arith.constant 0 : i32
    %c0_i32_0 = arith.constant 0 : i32
    %c0_i32_1 = arith.constant 0 : i32
    return %c0_i32, %c0_i32_0 : i32, i32
  }
  func.func @transform_13(%arg0: i32) -> (i32, i32) {
    %c0_i32 = arith.constant 0 : i32
    %c0_i32_0 = arith.constant 0 : i32
    %c0_i32_1 = arith.constant 0 : i32
    return %c0_i32, %c0_i32_0 : i32, i32
  }
  func.func @transform_14(%arg0: i32) -> (i32, i32, i32) {
    %c0_i32 = arith.constant 0 : i32
    %c0_i32_0 = arith.constant 0 : i32
    %c0_i32_1 = arith.constant 0 : i32
    return %arg0, %c0_i32, %c0_i32_0 : i32, i32, i32
  }
}

</mosaic_0001>

<bundles_post_ra>
// kernel: tpu_custom_call.1
= control target key start
LH: loop header
LB: loop body
LE: loop exit
PB: predicated region body
PF: predicated region fallthrough
CT: control target
= control target key end

     0   :  { %s5101_s0 = inlined_call_operand.hbm [shape: f32[2,4,256], index: 0, kind: input, shape index: {}]   ;;  %s5102_s1 = inlined_call_operand.vmem [shape: f32[9,256], index: 1, kind: input, shape index: {}]   ;;  %s5103_s2 = inlined_call_operand.vmem [shape: f32[4,36], index: 2, kind: input, shape index: {}]   ;;  %s5104_s3 = inlined_call_operand.vmem [shape: f32[4,1], index: 3, kind: input, shape index: {}]   ;;  %s5105_s4 = inlined_call_operand.vmem [shape: f32[4,36], index: 4, kind: input, shape index: {}]   ;;  %s5106_s5 = inlined_call_operand.vmem [shape: f32[4,1], index: 5, kind: input, shape index: {}]   ;;  %s5107_s6 = inlined_call_operand.vmem [shape: f32[4,36], index: 6, kind: input, shape index: {}]   ;;  %s5108_s7 = inlined_call_operand.vmem [shape: f32[4,1], index: 7, kind: input, shape index: {}]   ;;  %s5109_s8 = inlined_call_operand.vmem [shape: f32[4,1], index: 8, kind: input, shape index: {}]   ;;  %s5110_s9 = inlined_call_operand.<no memory space> [shape: f32[1,1], index: 9, kind: input, shape index: {}]   ;;  %s5111_s10 = inlined_call_operand.vmem [shape: f32[4,1], index: 10, kind: input, shape index: {}]   ;;  %s5112_s11 = inlined_call_operand.vmem [shape: f32[4,1], index: 11, kind: input, shape index: {}]   ;;  %s5113_s12 = inlined_call_operand.vmem [shape: f32[4,36], index: 12, kind: input, shape index: {}]   ;;  %s5114_s13 = inlined_call_operand.vmem [shape: f32[4,1], index: 13, kind: input, shape index: {}]   ;;  %s5115_s14 = inlined_call_operand.hbm [shape: f32[2,4,256], index: 14, kind: output, shape index: {}]  }
   0x1   :  { %v19_v0 = vstv %s5110_s9 }
   0x2   :  { %20 = vst [vmem:[#allocation2] sm:$0x1] %v19_v0 }
   0x3   :  { %21 = vsyncpa [#allocation4], 0 }
   0x4   :  { %23 = vsyncpa [#allocation4 + $0x1], 0 }
   0x5   :  { %24 = vsyncpa [#allocation5], 0 }
   0x6   :  { %26 = vsyncpa [#allocation5 + $0x1], 0  ;;  %s3939_s15 = smov 0   ;;  %s3941_s16 = smov 0  }
   0x7   :  { %s3943_s17 = smov 0   ;;  %s3945_s18 = smov 0  }
   0x8 LB: > { %5137 = sst [smem:[#allocation9_spill]] %s3835_s15  ;;  %s3960_s9 = sadd.s32 4294967295, %s3847_s18   ;;  %s3847_s18 = sphi %s3945_s18, %s5166_s18   ;;  %s3843_s17 = sphi %s3943_s17, %s5168_s17   ;;  %s3839_s16 = sphi %s3941_s16, %s5170_s16   ;;  %s3835_s15 = sphi %s3939_s15, %s5169_s15  }
   0x9   : > { %5138 = sst [smem:[#allocation10_spill]] %s3843_s17  ;;  %s3428_s19 = sadd.s32 4294967294, %s3847_s18  }
   0xa   : > { %s3964_s20 = sadd.s32 1, %s3847_s18   ;;  %s39_s21 = sadd.s32 1, %s3843_s17 }
   0xb   : > { %5139 = sst [smem:[#allocation11_spill]] %s3964_s20  ;;  %s36_s22 = ssub.s32 %s3847_s18, %s3964_s20 }
   0xc   : > { %p46_p0 = scmp.ne.s32.totalorder %s3843_s17, %s3839_s16  ;;  %p37_p1 = scmp.eq.s32.totalorder %s36_s22, 0 }
   0xd   : > { %p47_p2 = scmp.eq.s32.totalorder %s3847_s18, 0  ;;  %p52_p3 = scmp.ne.s32.totalorder %s3839_s16, %s3835_s15 }
   0xe   : > { %p53_p4 = scmp.eq.s32.totalorder %s3960_s9, 0  ;;  %p349_p7 = scmp.eq.s32.totalorder %s3960_s9, 1 }
   0xf   : > { %s3976_s23 = scalar_select %p37_p1, %s3843_s17, %s39_s21  }
  0x10   : > { %p3978_p5 = por %p47_p2, %p46_p0  ;;  %p3982_p6 = por %p53_p4, %p52_p3 }
  0x11   : > { %5140 = sst [smem:[#allocation12_spill]] %s3976_s23  ;;  %p355_p8 = scmp.eq.s32.totalorder %s3428_s19, 1 }
  0x12   : > { %p3698_p10 = scmp.lt.s32.totalorder %s3847_s18, 2  ;;  %p3989_p11 = por %p349_p7, %p46_p0 }
  0x13   : > { %p3993_p12 = por %p355_p8, %p52_p3  ;;  %s414_s28 = sand.u32 1, %s3843_s17  }
  0x14   : > { %s5143_s26 = scalar_select %p3989_p11, 1, 0 }
  0x15   : > { %s5144_s27 = scalar_select %p3993_p12, 1, 0 }
  0x16   : > { %s3444_s29 = sshll.u32 %s3847_s18, 7  ;;  %s3431_s30 = sshll.u32 %s414_s28, 3 }
  0x17   : > { %s4002_s23 = scalar_lea.hbm %s5101_s0, %s3444_s29  ;;  %s418_s19 = scalar_lea.vmem [#allocation3], %s3431_s30 }
  0x18   : > { %s426_s20 = sshll.u32 %s418_s19, 4  ;;  %p4006_p13 = pnand %p3698_p10, %p3978_p5  ;;  %s4010_s20 = int_to_ptr.vmem [resolvable:$true] %s426_s20 }
  0x19   : > { %s415_s21 = scalar_lea.sflag [#allocation4], %s414_s28  ;;  %s3751_s29 = scalar_lea.hbm %s4002_s23, 128 }
  0x1a   : > { %p3752_p2 = scmp.ne.s32.totalorder %s4002_s23, %s3751_s29  ;;  %p3753_p3 = pneg %p4006_p13 }
  0x1b   : > { %s3756_s22 = scalar_lea.hbm %s5101_s0, 256  ;;  %p3757_p5 = scmp.lt.u32.totalorder %s4002_s23, %s5101_s0 }
  0x1c   : > { %p3754_p4 = pnand %p3753_p3, %p3752_p2  ;;  %p3758_p8 = scmp.lt.u32.totalorder %s3756_s22, %s3751_s29 }
  0x1d   : > { %p3760_p9 = scmp.lt.u32.totalorder %s3751_s29, %s4002_s23 }
  0x1e   : > { %p3755_p7 = pneg %p3754_p4  ;;  %p3759_p10 = por %p3758_p8, %p3757_p5 }
  0x20   : > { %p3761_p0 = por %p3760_p9, %p3759_p10 }
  0x22   : > { %p3762_p1 = pnand %p3761_p0, %p3755_p7 }
  0x24   : > { %3765 = shalt.err (!%p3762_p1)
}
  0x25   : > { %s3766_s28 = scalar_lea.vmem %s4010_s20, 128  ;;  %s3849_s24 = smov [#allocation3]  }
  0x26   : > { %p3767_p2 = scmp.ne.s32.totalorder %s4010_s20, %s3766_s28  ;;  %s3771_s30 = sshll.u32 %s3849_s24, 4  ;;  %s3772_s30 = int_to_ptr.vmem [resolvable:$false] %s3771_s30 }
  0x27   : > { %s3773_s17 = scalar_lea.vmem %s3772_s30, 256  ;;  %p3774_p11 = scmp.lt.s32.totalorder %s4010_s20, %s3772_s30 }
  0x28   : > { %p3769_p4 = pnand %p3767_p2, %p3753_p3  ;;  %p3775_p5 = scmp.lt.s32.totalorder %s3773_s17, %s3766_s28 }
  0x2a   : > { %p3770_p12 = pneg %p3769_p4  ;;  %p3776_p8 = por %p3775_p5, %p3774_p11 }
  0x2c   : > { %p3777_p9 = pnand %p3776_p8, %p3770_p12 }
  0x2e   : > { %3780 = shalt.err (!%p3777_p9)
}
  0x2f   : > { %3693 = dma.hbm_to_vmem [thread:$0]  (!%p4006_p13), %s4002_s23, 128, %s4010_s20, %s415_s21  }
  0x30   : > { %p5146_p0 = scmp.lt.s32.totalorder %s3847_s18, 3  ;;  %p5147_p1 = scmp.ge.s32.totalorder %s3847_s18, 1 }
  0x32   : > { %p432_p3 = pnand %p5147_p1, %p5146_p0 }
  0x33   : > { %s4044_s29 = sand.u32 (!%p432_p3), 1, %s3839_s16  }
  0x34   : > { %435 = sbr.rel (%p432_p3) target bundleno = 2110 (0x83e), region = 76  ;;  %s5121_s22 = sshll.u32 (!%p432_p3), %s4044_s29, 3 }
  0x35   : > { %s438_s19 = scalar_lea.sflag (!%p432_p3), [#allocation4], %s4044_s29  ;;  %s441_s15 = scalar_lea.vmem (!%p432_p3), [#allocation3], %s5121_s22 }
  0x3b   : > { %3826 = dma.done.wait (%p3982_p6), %s438_s19, 128  }
  0x3c   : > { %3828 = vsyncadd (%p3982_p6), %s438_s19, 4294967168  ;;  %v4054_v1 = vld [vmem:[%s441_s15] sm:$0xff]  ;;  %s3850_s20 = smov 1   ;;  %s3851_s23 = smov 16   ;;  %v3857_v3 = vmov 0.0   ;;  %v3859_v5 = vmov 0   ;;  %v503_v6 = vlaneseq }
  0x3d   : > { %552 = vrot.lane.b32.xlu1 %v4054_v1, %s3850_s20  ;;  %518 = vrot.lane.b32.xlu0 %v4054_v1, %s3851_s23  ;;  %v4062_v2 = vcombine.high %v4054_v1, %v4054_v1  ;;  %s3852_s21 = smov 17   ;;  %s3853_s25 = smov 15   ;;  %v670_v4 = vld [vmem:[%s5104_s3] sm:$0xf]  ;;  %v4112_v14 = vld [vmem:[%s5102_s1 + $0x8] sm:$0xff]  ;;  %vm661_vm4 = vcmask 1043456  }
  0x3e   : > { %s3854_s28 = smov 127   ;;  %s5132_s24 = smov 112   ;;  %760 = vmatprep.mubr.f32.mxu0 %v3857_v3  ;;  %1441 = vmatprep.mubr.f32.mxu1 %v3857_v3  ;;  %v4097_v7 = vshrl.u32 %v503_v6, 7  ;;  %v4099_v8 = vand.u32 127, %v503_v6  ;;  %v4105_v12 = vld [vmem:[%s5102_s1] sm:$0xff]  ;;  %vm676_vm6 = vcmask 293888  }
  0x3f   : > { %s5122_s30 = smov 113   ;;  %s3858_s17 = smov 111   ;;  %3742 = vset.pattern.permute.xlu0 %v3859_v5  ;;  %3743 = vset.pattern.permute.xlu1 %v3859_v5  ;;  %v495_v37 = vld [vmem:[%s5103_s2] sm:$0xf]  ;;  %vm2626_vm10 = vcmask 3072  }
  0x40   : > { %v561_v11 = vsub.s32 3, %v4097_v7  ;;  %v527_v13 = vsub.s32 1, %v4097_v7  ;;  %vm556_vm0 = vcmp.lt.s32.totalorder %v4099_v8, 1  ;;  %v4115_v15 = vsub.s32 0, %v4097_v7  ;;  %s5151_s19 = smov 113   ;;  %s5161_s22 = sshll.u32 %s4044_s29, 3 }
  0x41   : > { %499 = vrot.lane.b32.xlu0 %v4054_v1, %s3852_s21  ;;  %554 = vrot.lane.b32.xlu1 %v4062_v2, %s3850_s20  ;;  %v544_v16 = vsub.s32 2, %v4097_v7  ;;  %vm505_vm1 = vcmp.lt.s32.totalorder %v4099_v8, 17  ;;  %v578_v19 = vsub.s32 5, %v4097_v7  ;;  %vm522_vm2 = vcmp.lt.s32.totalorder %v4099_v8, 16  ;;  %p5162_p11 = scmp.ne.s32.totalorder %s5143_s26, 0 }
  0x42   : > { %v4121_v20 = vrot.slane %v4105_v12, %v561_v11  ;;  %vm539_vm3 = vcmp.lt.s32.totalorder %v4099_v8, 15  ;;  %v4128_v22 = vrot.slane %v4112_v14, %v561_v11  ;;  %v4131_v23 = vrot.slane %v4105_v12, %v527_v13 }
  0x43   : > { %v4134_v24 = vrot.slane %v4112_v14, %v527_v13  ;;  %v4140_v26 = vrot.slane %v4105_v12, %v4115_v15  ;;  %v4144_v27 = vrot.slane %v4112_v14, %v4115_v15  ;;  %v4147_v28 = vrot.slane %v4105_v12, %v544_v16 }
  0x44   : > { %v4150_v31 = vrot.slane %v4112_v14, %v544_v16  ;;  %vm573_vm5 = vcmp.lt.s32.totalorder %v4099_v8, 127  ;;  %v4154_v32 = vrot.slane %v4105_v12, %v578_v19  ;;  %v4172_v42 = vrot.slane %v4112_v14, %v578_v19 }
  0x45   : > { %501 = vrot.lane.b32.xlu1 %v4062_v2, %s3852_s21  ;;  %520 = vrot.lane.b32.xlu0 %v4062_v2, %s3851_s23  ;;  %vm607_vm7 = vcmp.lt.s32.totalorder %v4099_v8, 112  ;;  %v612_v43 = vsub.s32 7, %v4097_v7  ;;  %v595_v44 = vsub.s32 6, %v4097_v7  ;;  %v678_v50 = vsel %vm676_vm6, %v495_v37, 0 }
  0x46   : > { %v4191_v62 = vand.u32 4294901760, %v678_v50  ;;  %vm590_vm8 = vcmp.lt.s32.totalorder %v4099_v8, 113  ;;  %vm624_vm9 = vcmp.lt.s32.totalorder %v4099_v8, 111 }
  0x47   : > { %v4188_v59 = vrot.slane %v4105_v12, %v612_v43  ;;  %v4204_v11 = vrot.slane %v4105_v12, %v595_v44 }
  0x49   : > { %537 = vrot.lane.b32.xlu1 %v4062_v2, %s3853_s25  ;;  %535 = vrot.lane.b32.xlu0 %v4054_v1, %s3853_s25 }
  0x4d   : > { %571 = vrot.lane.b32.xlu1 %v4062_v2, %s3854_s28  ;;  %569 = vrot.lane.b32.xlu0 %v4054_v1, %s3854_s28 }
  0x51   : > { %605 = vrot.lane.b32.xlu1 %v4062_v2, %s5132_s24  ;;  %603 = vrot.lane.b32.xlu0 %v4054_v1, %s5132_s24 }
  0x55   : > { %588 = vrot.lane.b32.xlu1 %v4062_v2, %s5122_s30  ;;  %586 = vrot.lane.b32.xlu0 %v4054_v1, %s5122_s30  ;;  %s485_s30 = scalar_lea.vmem [#allocation6], %s5161_s22 }
  0x56   : > { %s3358_s15 = sshll.u32 %s485_s30, 4  ;;  %s5059_s15 = int_to_ptr.vmem [resolvable:$true] %s3358_s15 }
  0x59   : > { %622 = vrot.lane.b32.xlu1 %v4062_v2, %s3858_s17  ;;  %620 = vrot.lane.b32.xlu0 %v4054_v1, %s3858_s17 }
  0x5d   : > { %673 = vperm.xlu0 %3742, %v670_v4   ;;  %v4194_v4 = vrot.slane %v4112_v14, %v612_v43 }
  0xaf   : > { %v553_v9 = vpop.permute.xlu1 %552  ;;  %v519_v10 = vpop.permute.xlu0 %518 }
  0xb3   : > { %v500_v17 = vpop.permute.xlu0 %499  ;;  %v555_v18 = vpop.permute.xlu1 %554 }
  0xb4   : > { %v558_v21 = vsel %vm556_vm0, %v555_v18, %v553_v9  ;;  %v557_v25 = vsel %vm556_vm0, %v553_v9, %v555_v18 }
  0xb5   : > { %v567_v33 = vmul.f32 %v4121_v20, %v558_v21  ;;  %v568_v38 = vmul.f32 %v4128_v22, %v557_v25 }
  0xb7   : > { %v502_v29 = vpop.permute.xlu1 %501  ;;  %v521_v30 = vpop.permute.xlu0 %520  ;;  %v645_v51 = vrot.slane %v567_v33, 4  ;;  %v646_v55 = vrot.slane %v568_v38, 4 }
  0xb8   : > { %v506_v34 = vsel %vm505_vm1, %v500_v17, %v502_v29  ;;  %v523_v35 = vsel %vm522_vm2, %v519_v10, %v521_v30  ;;  %v524_v36 = vsel %vm522_vm2, %v521_v30, %v519_v10  ;;  %v507_v39 = vsel %vm505_vm1, %v502_v29, %v500_v17 }
  0xb9   : > { %v533_v40 = vmul.f32 %v4131_v23, %v524_v36  ;;  %v534_v41 = vmul.f32 %v4134_v24, %v523_v35  ;;  %v517_v45 = vmul.f32 %v4144_v27, %v506_v34  ;;  %v516_v52 = vmul.f32 %v4140_v26, %v507_v39 }
  0xba   : > { %v4215_v29 = vsub.f32 %v678_v50, %v4191_v62  ;;  %v4220_v36 = vrot.slane %v4112_v14, %v595_v44 }
  0xbb   : > { %v639_v46 = vrot.slane %v533_v40, 4  ;;  %v640_v47 = vrot.slane %v534_v41, 4  ;;  %v538_v48 = vpop.permute.xlu1 %537  ;;  %v536_v49 = vpop.permute.xlu0 %535 }
  0xbc   : > { %v540_v53 = vsel %vm539_vm3, %v536_v49, %v538_v48  ;;  %v541_v54 = vsel %vm539_vm3, %v538_v48, %v536_v49  ;;  %v5126_v48 = vand.u32 4294901760, %v4215_v29 }
  0xbd   : > { %v550_v56 = vmul.f32 %v4147_v28, %v541_v54  ;;  %v551_v57 = vmul.f32 %v4150_v31, %v540_v53  ;;  %v663_v58 = vsel %vm661_vm4, %v517_v45, %v640_v47  ;;  %v662_v61 = vsel %vm661_vm4, %v516_v52, %v639_v46 }
  0xbe   : > { %v686_v60 = vand.u32 4294901760, %v663_v58  ;;  %v688_v17 = vand.u32 4294901760, %v662_v61 }
  0xbf   : > { %v572_v63 = vpop.permute.xlu1 %571  ;;  %v570_v0 = vpop.permute.xlu0 %569  ;;  %v665_v5 = vsel %vm661_vm4, %v551_v57, %v646_v55  ;;  %v664_v6 = vsel %vm661_vm4, %v550_v56, %v645_v51 }
  0xc0   : > { %v574_v7 = vsel %vm573_vm5, %v570_v0, %v572_v63  ;;  %v575_v9 = vsel %vm573_vm5, %v572_v63, %v570_v0  ;;  %v690_v10 = vand.u32 4294901760, %v665_v5  ;;  %v692_v18 = vand.u32 4294901760, %v664_v6 }
  0xc1   : > { %v584_v13 = vmul.f32 %v4154_v32, %v574_v7  ;;  %v585_v16 = vmul.f32 %v4172_v42, %v575_v9  ;;  %v4210_v21 = vsub.f32 %v663_v58, %v686_v60  ;;  %v4237_v45 = vsub.f32 %v662_v61, %v688_v17  ;;  %v4262_v61 = vld [vmem:[%s5102_s1 + $0x18] ss:$0 sm:$0xff] }
  0xc2   : > { %v4208_v19 = vpack.c.bf16 %v690_v10, %v686_v60  ;;  %v4212_v25 = vsub.f32 %v665_v5, %v690_v10  ;;  %v4217_v35 = vpack.c.bf16 %v692_v18, %v688_v17  ;;  %v4227_v39 = vsub.f32 %v664_v6, %v692_v18  ;;  %v4257_v60 = vld [vmem:[%s5102_s1 + $0x10] ss:$0 sm:$0xff] }
  0xc3   : > { %v651_v30 = vrot.slane %v584_v13, 4  ;;  %v652_v33 = vrot.slane %v585_v16, 4  ;;  %v606_v34 = vpop.permute.xlu1 %605  ;;  %v604_v12 = vpop.permute.xlu0 %603  ;;  %v774_v47 = vand.u32 4294901760, %v4210_v21  ;;  %v764_v0 = vsub.f32 %v4215_v29, %v5126_v48 }
  0xc4   : > { %v608_v37 = vsel %vm607_vm7, %v604_v12, %v606_v34  ;;  %v609_v38 = vsel %vm607_vm7, %v606_v34, %v604_v12  ;;  %3447 = vmatprep.subr.bf16.mxu0 %v4208_v19  ;;  %v786_v40 = vand.u32 4294901760, %v4212_v25  ;;  %v792_v58 = vand.u32 4294901760, %v4227_v39 }
  0xc5   : > { %v618_v41 = vmul.f32 %v4188_v59, %v608_v37  ;;  %v619_v43 = vmul.f32 %v4194_v4, %v609_v38  ;;  %3449 = vmatpush1.bf16.msra.mxu0 %v4217_v35  ;;  %v667_v14 = vsel %vm661_vm4, %v4062_v2, %v652_v33  ;;  %v666_v44 = vsel %vm661_vm4, %v4054_v1, %v651_v30 }
  0xc6   : > { %v694_v46 = vand.u32 4294901760, %v667_v14  ;;  %v696_v51 = vand.u32 4294901760, %v666_v44  ;;  %v787_v52 = vsub.f32 %v4212_v25, %v786_v40  ;;  %v775_v63 = vsub.f32 %v4210_v21, %v774_v47 }
  0xc7   : > { %v589_v49 = vpop.permute.xlu1 %588  ;;  %v587_v50 = vpop.permute.xlu0 %586  ;;  %v657_v2 = vrot.slane %v618_v41, 4  ;;  %v658_v55 = vrot.slane %v619_v43, 4  ;;  %v780_v5 = vand.u32 4294901760, %v4237_v45  ;;  %v793_v38 = vsub.f32 %v4227_v39, %v792_v58 }
  0xc8   : > { %v591_v1 = vsel %vm590_vm8, %v587_v50, %v589_v49  ;;  %v592_v53 = vsel %vm590_vm8, %v589_v49, %v587_v50  ;;  %v4249_v54 = vsub.f32 %v667_v14, %v694_v46  ;;  %v4273_v13 = vsub.f32 %v666_v44, %v696_v51 }
  0xc9   : > { %v601_v56 = vmul.f32 %v4204_v11, %v591_v1  ;;  %v602_v57 = vmul.f32 %v4220_v36, %v592_v53  ;;  %v788_v37 = vand.u32 4294901760, %v787_v52  ;;  %v781_v52 = vsub.f32 %v4237_v45, %v780_v5 }
  0xca   : > { %v5124_v16 = vand.u32 4294901760, %v4249_v54 }
  0xcb   : > { %v623_v6 = vpop.permute.xlu1 %622  ;;  %v621_v7 = vpop.permute.xlu0 %620  ;;  %v669_v9 = vsel %vm661_vm4, %v602_v57, %v658_v55  ;;  %v668_v10 = vsel %vm661_vm4, %v601_v56, %v657_v2  ;;  %v5125_v2 = vand.u32 4294901760, %v4273_v13  ;;  %v765_v55 = vand.u32 4294901760, %v764_v0 }
  0xcc   : > { %v625_v17 = vsel %vm624_vm9, %v621_v7, %v623_v6  ;;  %v626_v18 = vsel %vm624_vm9, %v623_v6, %v621_v7  ;;  %v698_v30 = vand.u32 4294901760, %v669_v9  ;;  %v700_v33 = vand.u32 4294901760, %v668_v10 }
  0xcd   : > { %v635_v34 = vmul.f32 %v4257_v60, %v625_v17  ;;  %v636_v12 = vmul.f32 %v4262_v61, %v626_v18  ;;  %v794_v56 = vand.u32 4294901760, %v793_v38  ;;  %v782_v17 = vand.u32 4294901760, %v781_v52 }
  0xce   : > { %v4285_v41 = vpack.c.bf16 %v698_v30, %v694_v46  ;;  %v4287_v43 = vsub.f32 %v669_v9, %v698_v30  ;;  %v4289_v14 = vpack.c.bf16 %v700_v33, %v696_v51  ;;  %v4291_v44 = vsub.f32 %v668_v10, %v700_v33 }
  0xcf   : > { %v681_v49 = vsel %vm661_vm4, %v635_v34, 0  ;;  %v684_v50 = vsel %vm661_vm4, %v636_v12, 0  ;;  %v799_v51 = vsub.f32 %v4249_v54, %v5124_v16  ;;  %v776_v9 = vand.u32 4294901760, %v775_v63 }
  0xd0   : > { %v4299_v1 = vand.u32 4294901760, %v684_v50  ;;  %v4301_v46 = vand.u32 4294901760, %v681_v49  ;;  %3451 = vmatprep.subr.bf16.mxu0 %v4285_v41  ;;  %v810_v53 = vand.u32 4294901760, %v4287_v43  ;;  %v816_v57 = vand.u32 4294901760, %v4291_v44 }
  0xd1   : > { %3453 = vmatpush1.bf16.msra.mxu0 %v4289_v14  ;;  %v805_v18 = vsub.f32 %v4273_v13, %v5125_v2  ;;  %v3454_v0 = vpack.c.bf16 %v788_v37, %v776_v9  ;;  %v800_v33 = vand.u32 4294901760, %v799_v51  ;;  %v3456_v38 = vpack.c.bf16 %v794_v56, %v782_v17 }
  0xd2   : > { %v821_v6 = vsub.f32 %v684_v50, %v4299_v1  ;;  %v827_v7 = vsub.f32 %v681_v49, %v4301_v46  ;;  %703 = vmatprep.subr.mxu0 %v4299_v1  ;;  %v811_v10 = vsub.f32 %v4287_v43, %v810_v53  ;;  %v817_v30 = vsub.f32 %v4291_v44, %v816_v57 }
  0xd3   : > { %v806_v52 = vand.u32 4294901760, %v805_v18  ;;  %v3462_v56 = vpack.c.bf16 %v4212_v25, %v4210_v21  ;;  %v3466_v9 = vpack.c.bf16 %v4287_v43, %v4249_v54  ;;  %v3480_v43 = vpack.c.bf16 %v792_v58, %v780_v5 }
  0xd4   : > { %v812_v34 = vand.u32 4294901760, %v811_v10  ;;  %v822_v12 = vand.u32 4294901760, %v821_v6  ;;  %v818_v49 = vand.u32 4294901760, %v817_v30  ;;  %v828_v50 = vand.u32 4294901760, %v827_v7 }
  0xd5   : > { %705 = vmatpush1.msra.mxu0 %v4301_v46  ;;  %v5150_v21 = vand.u32 4294901760, %v4273_v13 }
  0xd6   : > { %3455 = vmatprep.subr.bf16.mxu0 %v3454_v0  ;;  %766 = vmatmul.mubr.f32.vlgmr.msra.gmra.mrb[0].mxu0 %v765_v55  ;;  %v3458_v63 = vpack.c.bf16 %v812_v34, %v800_v33  ;;  %v823_v16 = vsub.f32 %v821_v6, %v822_v12  ;;  %v3460_v2 = vpack.c.bf16 %v818_v49, %v806_v52 }
  0xd7   : > { %3457 = vmatpush1.bf16.msra.mxu0 %v3456_v38  ;;  %886 = vmatprep.mubr.f32.mxu0 %v3857_v3  ;;  %v829_v48 = vsub.f32 %v827_v7, %v828_v50  ;;  %v3464_v55 = vpack.c.bf16 %v4227_v39, %v4237_v45  ;;  %v3484_v25 = vpack.c.bf16 %v816_v57, %v5150_v21 }
  0xd8   : > { %3459 = vmatprep.subr.bf16.mxu0 %v3458_v63  ;;  %v824_v37 = vand.u32 4294901760, %v823_v16  ;;  %v3478_v16 = vpack.c.bf16 %v786_v40, %v774_v47 }
  0xd9   : > { %v830_v51 = vand.u32 4294901760, %v829_v48  ;;  %v3468_v48 = vpack.c.bf16 %v4291_v44, %v4273_v13  ;;  %v5148_v44 = vand.u32 4294901760, %v4215_v29 }
  0xdb   : > { %3461 = vmatpush1.bf16.msra.mxu0 %v3460_v2  ;;  %v5149_v2 = vand.u32 4294901760, %v4249_v54 }
  0xdc   : > { %825 = vmatprep.subr.mxu0 %v824_v37 }
  0xdf   : > { %831 = vmatpush1.msra.mxu0 %v830_v51 }
  0xe0   : > { %3463 = vmatprep.subr.bf16.mxu0 %v3462_v56  ;;  %888 = vmatmul.mubr.f32.vlgmr.msra.gmra.mrb[0].mxu0 %v4191_v62 }
  0xe1   : > { %3465 = vmatpush1.bf16.msra.mxu0 %v3464_v55  ;;  %978 = vmatprep.mubr.f32.mxu0 %v3857_v3 }
  0xe2   : > { %3467 = vmatprep.subr.bf16.mxu0 %v3466_v9 }
  0xe5   : > { %3469 = vmatpush1.bf16.msra.mxu0 %v3468_v48 }
  0xe6   : > { %920 = vmatprep.subr.mxu0 %v821_v6  ;;  %v3482_v6 = vpack.c.bf16 %v810_v53, %v5149_v2 }
  0xe9   : > { %923 = vmatpush1.msra.mxu0 %v827_v7 }
  0xea   : > { %3471 = vmatprep.subr.bf16.mxu0 %v4208_v19  ;;  %981 = vmatmul.mubr.f32.vlgmr.msra.gmra.mrb[0].mxu0 %v4215_v29  ;;  %v674_v29 = vpop.permute.xlu0 %673 }
  0xeb   : > { %3473 = vmatpush1.bf16.msra.mxu0 %v4217_v35  ;;  %1061 = vmatprep.mubr.f32.mxu0 %v3857_v3 }
  0xec   : > { %3475 = vmatprep.subr.bf16.mxu0 %v4285_v41 }
  0xef   : > { %3477 = vmatpush1.bf16.msra.mxu0 %v4289_v14 }
  0xf0   : > { %1004 = vmatprep.subr.mxu0 %v4299_v1 }
  0xf3   : > { %1006 = vmatpush1.msra.mxu0 %v4301_v46 }
  0xf4   : > { %3479 = vmatprep.subr.bf16.mxu0 %v3478_v16  ;;  %1065 = vmatmul.mubr.f32.vlgmr.msra.gmra.mrb[0].mxu0 %v5148_v44 }
  0xf5   : > { %3481 = vmatpush1.bf16.msra.mxu0 %v3480_v43  ;;  %1165 = vmatprep.mubr.f32.mxu0 %v3857_v3 }
  0xf6   : > { %3483 = vmatprep.subr.bf16.mxu0 %v3482_v6 }
  0xf9   : > { %3485 = vmatpush1.bf16.msra.mxu0 %v3484_v25 }
  0xfa   : > { %1106 = vmatprep.subr.mxu0 %v822_v12 }
  0xfd   : > { %1110 = vmatpush1.msra.mxu0 %v828_v50 }
  0xfe   : > { %3487 = vmatprep.subr.bf16.mxu0 %v4208_v19  ;;  %1167 = vmatmul.mubr.f32.vlgmr.msra.gmra.mrb[0].mxu0 %v4191_v62 }
  0xff   : > { %3489 = vmatpush1.bf16.msra.mxu0 %v4217_v35  ;;  %1247 = vmatprep.mubr.f32.mxu0 %v3857_v3 }
 0x100   : > { %3491 = vmatprep.subr.bf16.mxu0 %v4285_v41 }
 0x103   : > { %3493 = vmatpush1.bf16.msra.mxu0 %v4289_v14 }
 0x104   : > { %1190 = vmatprep.subr.mxu0 %v4299_v1 }
 0x107   : > { %1192 = vmatpush1.msra.mxu0 %v4301_v46  ;;  %v1255_v46 = vld [vmem:[%s5105_s4] sm:$0xf] }
 0x108   : > { %1249 = vmatmul.mubr.f32.vlgmr.msra.gmra.mrb[0].mxu0 %v4191_v62  ;;  %v1352_v62 = vld [vmem:[%s5106_s5] sm:$0xf]  ;;  %v1359_v17 = vsel %vm676_vm6, %v1255_v46, 0 }
 0x109   : > { %2124 = vmatprep.mubr.f32.mxu0 %v3857_v3  ;;  %v4430_v9 = vand.u32 4294901760, %v1359_v17 }
 0x1db   : > { %v1250_v19 = vpop.f32.mrb[0].mxu0 }
 0x1dc   : > { %v4363_v39 = vadd.f32 %v1250_v19, %v674_v29  ;;  %v1252_v40 = vpop.f32.mrb[1].mxu0 }
 0x1dd   : > { %v4369_v35 = vadd.f32 %v1252_v40, %v674_v29 }
 0x1de   : > { %1280 = vrot.lane.b32.xlu0 %v4363_v39, %s3850_s20  ;;  %1264 = vrot.lane.b32.xlu1 %v4363_v39, %s3851_s23 }
 0x1e2   : > { %1256 = vrot.lane.b32.xlu0 %v4363_v39, %s3852_s21  ;;  %1266 = vrot.lane.b32.xlu1 %v4369_v35, %s3851_s23 }
 0x1e6   : > { %1272 = vrot.lane.b32.xlu0 %v4363_v39, %s3853_s25  ;;  %1282 = vrot.lane.b32.xlu1 %v4369_v35, %s3850_s20 }
 0x1ea   : > { %1288 = vrot.lane.b32.xlu0 %v4363_v39, %s3854_s28  ;;  %1258 = vrot.lane.b32.xlu1 %v4369_v35, %s3852_s21 }
 0x1ee   : > { %1304 = vrot.lane.b32.xlu0 %v4363_v39, %s5132_s24  ;;  %1274 = vrot.lane.b32.xlu1 %v4369_v35, %s3853_s25 }
 0x1f2   : > { %1296 = vrot.lane.b32.xlu0 %v4363_v39, %s5151_s19  ;;  %1290 = vrot.lane.b32.xlu1 %v4369_v35, %s3854_s28 }
 0x1f6   : > { %1312 = vrot.lane.b32.xlu0 %v4363_v39, %s3858_s17  ;;  %1306 = vrot.lane.b32.xlu1 %v4369_v35, %s5132_s24 }
 0x1fa   : > { %1355 = vperm.xlu0 %3742, %v1352_v62   ;;  %1298 = vrot.lane.b32.xlu1 %v4369_v35, %s5151_s19 }
 0x1fe   : > { %1314 = vrot.lane.b32.xlu1 %v4369_v35, %s3858_s17 }
 0x250   : > { %v1281_v45 = vpop.permute.xlu0 %1280  ;;  %v1265_v47 = vpop.permute.xlu1 %1264 }
 0x254   : > { %v1257_v54 = vpop.permute.xlu0 %1256  ;;  %v1267_v58 = vpop.permute.xlu1 %1266 }
 0x255   : > { %v1269_v5 = vsel %vm522_vm2, %v1267_v58, %v1265_v47  ;;  %v1268_v13 = vsel %vm522_vm2, %v1265_v47, %v1267_v58 }
 0x256   : > { %v1270_v1 = vmul.f32 %v1269_v5, %v4131_v23  ;;  %v1271_v53 = vmul.f32 %v1268_v13, %v4134_v24  ;;  %v4445_v5 = vsub.f32 %v1359_v17, %v4430_v9 }
 0x258   : > { %v1273_v41 = vpop.permute.xlu0 %1272  ;;  %v1283_v14 = vpop.permute.xlu1 %1282  ;;  %v1322_v18 = vrot.slane %v1270_v1, 4  ;;  %v1323_v34 = vrot.slane %v1271_v53, 4 }
 0x259   : > { %v1285_v57 = vsel %vm556_vm0, %v1283_v14, %v1281_v45  ;;  %v1284_v7 = vsel %vm556_vm0, %v1281_v45, %v1283_v14 }
 0x25a   : > { %v1286_v30 = vmul.f32 %v1285_v57, %v4121_v20  ;;  %v1287_v12 = vmul.f32 %v1284_v7, %v4128_v22 }
 0x25c   : > { %v1259_v10 = vpop.permute.xlu1 %1258  ;;  %v1289_v38 = vpop.permute.xlu0 %1288  ;;  %v1328_v51 = vrot.slane %v1286_v30, 4  ;;  %v1329_v48 = vrot.slane %v1287_v12, 4 }
 0x25d   : > { %v1260_v0 = vsel %vm505_vm1, %v1257_v54, %v1259_v10  ;;  %v1261_v33 = vsel %vm505_vm1, %v1259_v10, %v1257_v54 }
 0x25e   : > { %v1262_v49 = vmul.f32 %v1261_v33, %v4140_v26  ;;  %v1263_v50 = vmul.f32 %v1260_v0, %v4144_v27 }
 0x260   : > { %v1275_v63 = vpop.permute.xlu1 %1274  ;;  %v1345_v52 = vsel %vm661_vm4, %v1263_v50, %v1323_v34  ;;  %v1344_v37 = vsel %vm661_vm4, %v1262_v49, %v1322_v18  ;;  %v1305_v6 = vpop.permute.xlu0 %1304  ;;  %v5128_v50 = vand.u32 4294901760, %v4445_v5 }
 0x261   : > { %v1276_v56 = vsel %vm539_vm3, %v1273_v41, %v1275_v63  ;;  %v1277_v55 = vsel %vm539_vm3, %v1275_v63, %v1273_v41  ;;  %v1367_v44 = vand.u32 4294901760, %v1345_v52  ;;  %v1369_v2 = vand.u32 4294901760, %v1344_v37 }
 0x262   : > { %v1278_v16 = vmul.f32 %v1277_v55, %v4147_v28  ;;  %v1279_v43 = vmul.f32 %v1276_v56, %v4150_v31 }
 0x263   : > { %v4442_v58 = vsub.f32 %v1345_v52, %v1367_v44  ;;  %v4453_v1 = vsub.f32 %v1344_v37, %v1369_v2 }
 0x264   : > { %v1291_v21 = vpop.permute.xlu1 %1290  ;;  %v1347_v25 = vsel %vm661_vm4, %v1279_v43, %v1329_v48  ;;  %v1346_v29 = vsel %vm661_vm4, %v1278_v16, %v1328_v51  ;;  %v1297_v30 = vpop.permute.xlu0 %1296 }
 0x265   : > { %v1292_v19 = vsel %vm573_vm5, %v1289_v38, %v1291_v21  ;;  %v1293_v40 = vsel %vm573_vm5, %v1291_v21, %v1289_v38  ;;  %v1371_v62 = vand.u32 4294901760, %v1347_v25  ;;  %v1373_v45 = vand.u32 4294901760, %v1346_v29 }
 0x266   : > { %v1294_v47 = vmul.f32 %v1292_v19, %v4154_v32  ;;  %v1295_v54 = vmul.f32 %v1293_v40, %v4172_v42  ;;  %v1455_v49 = vand.u32 4294901760, %v4442_v58  ;;  %v1461_v63 = vand.u32 4294901760, %v4453_v1 }
 0x267   : > { %v4447_v13 = vpack.c.bf16 %v1371_v62, %v1367_v44  ;;  %v4449_v41 = vsub.f32 %v1347_v25, %v1371_v62  ;;  %v4451_v14 = vpack.c.bf16 %v1373_v45, %v1369_v2  ;;  %v4455_v7 = vsub.f32 %v1346_v29, %v1373_v45 }
 0x268   : > { %v1334_v46 = vrot.slane %v1294_v47, 4  ;;  %v1335_v53 = vrot.slane %v1295_v54, 4  ;;  %v1307_v57 = vpop.permute.xlu1 %1306  ;;  %v1456_v21 = vsub.f32 %v4442_v58, %v1455_v49  ;;  %v1445_v25 = vsub.f32 %v4445_v5, %v5128_v50  ;;  %v1313_v19 = vpop.permute.xlu0 %1312 }
 0x269   : > { %v1308_v10 = vsel %vm607_vm7, %v1305_v6, %v1307_v57  ;;  %v1309_v17 = vsel %vm607_vm7, %v1307_v57, %v1305_v6  ;;  %3495 = vmatprep.subr.bf16.mxu1 %v4447_v13  ;;  %v1467_v18 = vand.u32 4294901760, %v4449_v41  ;;  %v5129_v51 = vand.u32 4294901760, %v4455_v7 }
 0x26a   : > { %v1310_v0 = vmul.f32 %v1308_v10, %v4188_v59  ;;  %v1311_v33 = vmul.f32 %v1309_v17, %v4194_v4  ;;  %3497 = vmatpush1.bf16.msra.mxu1 %v4451_v14  ;;  %v1349_v34 = vsel %vm661_vm4, %v4369_v35, %v1335_v53  ;;  %v1348_v12 = vsel %vm661_vm4, %v4363_v39, %v1334_v46 }
 0x26b   : > { %v1375_v38 = vand.u32 4294901760, %v1349_v34  ;;  %v1377_v37 = vand.u32 4294901760, %v1348_v12  ;;  %v1468_v16 = vsub.f32 %v4449_v41, %v1467_v18  ;;  %v1462_v29 = vsub.f32 %v4453_v1, %v1461_v63 }
 0x26c   : > { %v1299_v52 = vpop.permute.xlu1 %1298  ;;  %v1340_v43 = vrot.slane %v1310_v0, 4  ;;  %v1341_v44 = vrot.slane %v1311_v33, 4  ;;  %v1474_v33 = vsub.f32 %v4455_v7, %v5129_v51 }
 0x26d   : > { %v1300_v56 = vsel %vm590_vm8, %v1297_v30, %v1299_v52  ;;  %v1301_v55 = vsel %vm590_vm8, %v1299_v52, %v1297_v30  ;;  %v4478_v48 = vsub.f32 %v1349_v34, %v1375_v38  ;;  %v4496_v47 = vsub.f32 %v1348_v12, %v1377_v37 }
 0x26e   : > { %v1302_v2 = vmul.f32 %v1300_v56, %v4204_v11  ;;  %v1303_v6 = vmul.f32 %v1301_v55, %v4220_v36  ;;  %v1469_v0 = vand.u32 4294901760, %v1468_v16 }
 0x26f   : > { %v5127_v54 = vand.u32 4294901760, %v4478_v48 }
 0x270   : > { %v1315_v40 = vpop.permute.xlu1 %1314  ;;  %v1351_v62 = vsel %vm661_vm4, %v1303_v6, %v1341_v44  ;;  %v1350_v45 = vsel %vm661_vm4, %v1302_v2, %v1340_v43  ;;  %v5131_v44 = vand.u32 4294901760, %v4496_v47 }
 0x271   : > { %v1316_v46 = vsel %vm624_vm9, %v1313_v19, %v1315_v40  ;;  %v1317_v53 = vsel %vm624_vm9, %v1315_v40, %v1313_v19  ;;  %v1379_v57 = vand.u32 4294901760, %v1351_v62  ;;  %v1381_v10 = vand.u32 4294901760, %v1350_v45 }
 0x272   : > { %v1318_v17 = vmul.f32 %v4257_v60, %v1316_v46  ;;  %v1319_v30 = vmul.f32 %v4262_v61, %v1317_v53  ;;  %v1480_v16 = vsub.f32 %v4478_v48, %v5127_v54  ;;  %v1457_v19 = vand.u32 4294901760, %v1456_v21 }
 0x273   : > { %v4508_v34 = vpack.c.bf16 %v1379_v57, %v1375_v38  ;;  %v4510_v12 = vsub.f32 %v1351_v62, %v1379_v57  ;;  %v4512_v52 = vpack.c.bf16 %v1381_v10, %v1377_v37  ;;  %v4514_v56 = vsub.f32 %v1350_v45, %v1381_v10 }
 0x274   : > { %v1362_v55 = vsel %vm661_vm4, %v1318_v17, 0  ;;  %v1365_v43 = vsel %vm661_vm4, %v1319_v30, 0  ;;  %v1446_v40 = vand.u32 4294901760, %v1445_v25  ;;  %v1475_v62 = vand.u32 4294901760, %v1474_v33 }
 0x275   : > { %v4522_v2 = vand.u32 4294901760, %v1365_v43  ;;  %v4524_v38 = vand.u32 4294901760, %v1362_v55  ;;  %3499 = vmatprep.subr.bf16.mxu1 %v4508_v34  ;;  %v1491_v37 = vand.u32 4294901760, %v4510_v12  ;;  %v5130_v6 = vand.u32 4294901760, %v4514_v56 }
 0x276   : > { %3501 = vmatpush1.bf16.msra.mxu1 %v4512_v52  ;;  %v1463_v10 = vand.u32 4294901760, %v1462_v29  ;;  %v1486_v17 = vsub.f32 %v4496_v47, %v5131_v44  ;;  %v3502_v21 = vpack.c.bf16 %v1469_v0, %v1457_v19  ;;  %v1481_v25 = vand.u32 4294901760, %v1480_v16 }
 0x277   : > { %v1502_v45 = vsub.f32 %v1365_v43, %v4522_v2  ;;  %v1508_v46 = vsub.f32 %v1362_v55, %v4524_v38  ;;  %1384 = vmatprep.subr.mxu1 %v4522_v2  ;;  %v1492_v53 = vsub.f32 %v4510_v12, %v1491_v37  ;;  %v1498_v57 = vsub.f32 %v4514_v56, %v5130_v6 }
 0x278   : > { %v3504_v55 = vpack.c.bf16 %v1475_v62, %v1463_v10  ;;  %v1487_v6 = vand.u32 4294901760, %v1486_v17  ;;  %v3510_v19 = vpack.c.bf16 %v4449_v41, %v4442_v58  ;;  %v3514_v62 = vpack.c.bf16 %v4510_v12, %v4478_v48 }
 0x279   : > { %v1493_v30 = vand.u32 4294901760, %v1492_v53  ;;  %v1503_v33 = vand.u32 4294901760, %v1502_v45  ;;  %v1499_v43 = vand.u32 4294901760, %v1498_v57  ;;  %v1509_v54 = vand.u32 4294901760, %v1508_v46 }
 0x27a   : > { %1386 = vmatpush1.msra.mxu1 %v4524_v38  ;;  %v5152_v12 = vand.u32 4294901760, %v4455_v7  ;;  %v5155_v58 = vand.u32 4294901760, %v4496_v47  ;;  %v5156_v41 = vand.u32 4294901760, %v4514_v56 }
 0x27b   : > { %3503 = vmatprep.subr.bf16.mxu1 %v3502_v21  ;;  %1447 = vmatmul.mubr.f32.vlgmr.msra.gmra.mrb[0].mxu1 %v1446_v40  ;;  %v3506_v50 = vpack.c.bf16 %v1493_v30, %v1481_v25  ;;  %v1504_v51 = vsub.f32 %v1502_v45, %v1503_v33  ;;  %v3508_v29 = vpack.c.bf16 %v1499_v43, %v1487_v6  ;;  %v5153_v6 = vand.u32 4294901760, %v4445_v5 }
 0x27c   : > { %3505 = vmatpush1.bf16.msra.mxu1 %v3504_v55  ;;  %1567 = vmatprep.mubr.f32.mxu1 %v3857_v3  ;;  %v1510_v44 = vsub.f32 %v1508_v46, %v1509_v54  ;;  %v3512_v40 = vpack.c.bf16 %v4455_v7, %v4453_v1 }
 0x27d   : > { %3507 = vmatprep.subr.bf16.mxu1 %v3506_v50  ;;  %v1505_v0 = vand.u32 4294901760, %v1504_v51  ;;  %v3516_v50 = vpack.c.bf16 %v4514_v56, %v4496_v47  ;;  %v3526_v51 = vpack.c.bf16 %v1467_v18, %v1455_v49  ;;  %v3532_v18 = vpack.c.bf16 %v5156_v41, %v5155_v58 }
 0x27e   : > { %v1511_v16 = vand.u32 4294901760, %v1510_v44  ;;  %v3528_v44 = vpack.c.bf16 %v5152_v12, %v1461_v63 }
 0x280   : > { %3509 = vmatpush1.bf16.msra.mxu1 %v3508_v29 }
 0x281   : > { %1506 = vmatprep.subr.mxu1 %v1505_v0 }
 0x284   : > { %1512 = vmatpush1.msra.mxu1 %v1511_v16 }
 0x285   : > { %3511 = vmatprep.subr.bf16.mxu1 %v3510_v19  ;;  %1569 = vmatmul.mubr.f32.vlgmr.msra.gmra.mrb[0].mxu1 %v4430_v9 }
 0x286   : > { %3513 = vmatpush1.bf16.msra.mxu1 %v3512_v40  ;;  %1659 = vmatprep.mubr.f32.mxu1 %v3857_v3 }
 0x287   : > { %3515 = vmatprep.subr.bf16.mxu1 %v3514_v62 }
 0x28a   : > { %3517 = vmatpush1.bf16.msra.mxu1 %v3516_v50 }
 0x28b   : > { %1601 = vmatprep.subr.mxu1 %v1502_v45  ;;  %v5154_v45 = vand.u32 4294901760, %v4478_v48 }
 0x28e   : > { %1604 = vmatpush1.msra.mxu1 %v1508_v46  ;;  %v3530_v46 = vpack.c.bf16 %v1491_v37, %v5154_v45 }
 0x28f   : > { %3519 = vmatprep.subr.bf16.mxu1 %v4447_v13  ;;  %1662 = vmatmul.mubr.f32.vlgmr.msra.gmra.mrb[0].mxu1 %v4445_v5  ;;  %v1356_v5 = vpop.permute.xlu0 %1355 }
 0x290   : > { %3521 = vmatpush1.bf16.msra.mxu1 %v4451_v14  ;;  %1742 = vmatprep.mubr.f32.mxu1 %v3857_v3 }
 0x291   : > { %3523 = vmatprep.subr.bf16.mxu1 %v4508_v34 }
 0x294   : > { %3525 = vmatpush1.bf16.msra.mxu1 %v4512_v52 }
 0x295   : > { %1685 = vmatprep.subr.mxu1 %v4522_v2 }
 0x298   : > { %1687 = vmatpush1.msra.mxu1 %v4524_v38 }
 0x299   : > { %3527 = vmatprep.subr.bf16.mxu1 %v3526_v51  ;;  %1746 = vmatmul.mubr.f32.vlgmr.msra.gmra.mrb[0].mxu1 %v5153_v6 }
 0x29a   : > { %3529 = vmatpush1.bf16.msra.mxu1 %v3528_v44  ;;  %1846 = vmatprep.mubr.f32.mxu1 %v3857_v3 }
 0x29b   : > { %3531 = vmatprep.subr.bf16.mxu1 %v3530_v46 }
 0x29e   : > { %3533 = vmatpush1.bf16.msra.mxu1 %v3532_v18 }
 0x29f   : > { %1787 = vmatprep.subr.mxu1 %v1503_v33 }
 0x2a2   : > { %1791 = vmatpush1.msra.mxu1 %v1509_v54 }
 0x2a3   : > { %3535 = vmatprep.subr.bf16.mxu1 %v4447_v13  ;;  %1848 = vmatmul.mubr.f32.vlgmr.msra.gmra.mrb[0].mxu1 %v4430_v9 }
 0x2a4   : > { %3537 = vmatpush1.bf16.msra.mxu1 %v4451_v14  ;;  %1928 = vmatprep.mubr.f32.mxu1 %v3857_v3 }
 0x2a5   : > { %3539 = vmatprep.subr.bf16.mxu1 %v4508_v34 }
 0x2a8   : > { %3541 = vmatpush1.bf16.msra.mxu1 %v4512_v52 }
 0x2a9   : > { %1871 = vmatprep.subr.mxu1 %v4522_v2 }
 0x2ac   : > { %1873 = vmatpush1.msra.mxu1 %v4524_v38  ;;  %v1938_v38 = vld [vmem:[%s5107_s6] sm:$0xf] }
 0x2ad   : > { %1930 = vmatmul.mubr.f32.vlgmr.msra.gmra.mrb[0].mxu1 %v4430_v9  ;;  %v2035_v9 = vld [vmem:[%s5108_s7] sm:$0xf]  ;;  %v2042_v21 = vsel %vm676_vm6, %v1938_v38, 0 }
 0x2ae   : > { %2843 = vmatprep.mubr.f32.mxu1 %v3857_v3  ;;  %v4654_v6 = vand.u32 4294901760, %v2042_v21 }
 0x380   : > { %v1931_v13 = vpop.f32.mrb[0].mxu1 }
 0x381   : > { %v3640_v1 = vadd.f32 %v1931_v13, %v1356_v5  ;;  %v1933_v7 = vpop.f32.mrb[1].mxu1 }
 0x382   : > { %v3641_v49 = vadd.f32 %v1933_v7, %v1356_v5 }
 0x383   : > { %v4587_v14 = vmax.f32 %v3640_v1, 0.0 }
 0x384   : > { %v4589_v63 = vmax.f32 %v3641_v49, 0.0 }
 0x385   : > { %1947 = vrot.lane.b32.xlu1 %v4587_v14, %s3851_s23 }
 0x386   : > { %1949 = vrot.lane.b32.xlu0 %v4589_v63, %s3851_s23 }
 0x389   : > { %1963 = vrot.lane.b32.xlu1 %v4587_v14, %s3850_s20 }
 0x38a   : > { %1965 = vrot.lane.b32.xlu0 %v4589_v63, %s3850_s20 }
 0x38d   : > { %1939 = vrot.lane.b32.xlu1 %v4587_v14, %s3852_s21 }
 0x38e   : > { %1941 = vrot.lane.b32.xlu0 %v4589_v63, %s3852_s21 }
 0x391   : > { %1955 = vrot.lane.b32.xlu1 %v4587_v14, %s3853_s25 }
 0x392   : > { %1957 = vrot.lane.b32.xlu0 %v4589_v63, %s3853_s25 }
 0x395   : > { %1971 = vrot.lane.b32.xlu1 %v4587_v14, %s3854_s28 }
 0x396   : > { %1973 = vrot.lane.b32.xlu0 %v4589_v63, %s3854_s28 }
 0x399   : > { %1987 = vrot.lane.b32.xlu1 %v4587_v14, %s5132_s24 }
 0x39a   : > { %1989 = vrot.lane.b32.xlu0 %v4589_v63, %s5132_s24  ;;  %s3445_s24 = sshll.u32 %s3960_s9, 7  ;;  %s3860_s9 = smov [#allocation6]  }
 0x39d   : > { %1979 = vrot.lane.b32.xlu1 %v4587_v14, %s5151_s19 }
 0x39e   : > { %1981 = vrot.lane.b32.xlu0 %v4589_v63, %s5151_s19 }
 0x3a1   : > { %1995 = vrot.lane.b32.xlu1 %v4587_v14, %s3858_s17 }
 0x3a2   : > { %1997 = vrot.lane.b32.xlu0 %v4589_v63, %s3858_s17 }
 0x3a5   : > { %2038 = vperm.xlu1 %3743, %v2035_v9  }
 0x3f7   : > { %v1948_v48 = vpop.permute.xlu1 %1947 }
 0x3f8   : > { %v1950_v47 = vpop.permute.xlu0 %1949 }
 0x3f9   : > { %v1952_v54 = vsel %vm522_vm2, %v1950_v47, %v1948_v48  ;;  %v1951_v34 = vsel %vm522_vm2, %v1948_v48, %v1950_v47 }
 0x3fa   : > { %v1953_v2 = vmul.f32 %v1952_v54, %v4131_v23  ;;  %v1954_v37 = vmul.f32 %v1951_v34, %v4134_v24 }
 0x3fb   : > { %v1964_v52 = vpop.permute.xlu1 %1963 }
 0x3fc   : > { %v1966_v56 = vpop.permute.xlu0 %1965  ;;  %v2005_v25 = vrot.slane %v1953_v2, 4  ;;  %v2006_v43 = vrot.slane %v1954_v37, 4 }
 0x3fd   : > { %v1968_v53 = vsel %vm556_vm0, %v1966_v56, %v1964_v52  ;;  %v1967_v57 = vsel %vm556_vm0, %v1964_v52, %v1966_v56  ;;  %v4669_v56 = vsub.f32 %v2042_v21, %v4654_v6 }
 0x3fe   : > { %v1969_v30 = vmul.f32 %v1968_v53, %v4121_v20  ;;  %v1970_v29 = vmul.f32 %v1967_v57, %v4128_v22 }
 0x3ff   : > { %v1940_v10 = vpop.permute.xlu1 %1939 }
 0x400   : > { %v1942_v17 = vpop.permute.xlu0 %1941  ;;  %v2011_v51 = vrot.slane %v1969_v30, 4  ;;  %v2012_v45 = vrot.slane %v1970_v29, 4 }
 0x401   : > { %v1943_v33 = vsel %vm505_vm1, %v1940_v10, %v1942_v17  ;;  %v1944_v55 = vsel %vm505_vm1, %v1942_v17, %v1940_v10 }
 0x402   : > { %v1945_v0 = vmul.f32 %v1944_v55, %v4140_v26  ;;  %v1946_v16 = vmul.f32 %v1943_v33, %v4144_v27 }
 0x403   : > { %v1956_v19 = vpop.permute.xlu1 %1955 }
 0x404   : > { %v2027_v40 = vsel %vm661_vm4, %v1945_v0, %v2005_v25  ;;  %v1958_v62 = vpop.permute.xlu0 %1957  ;;  %v2028_v50 = vsel %vm661_vm4, %v1946_v16, %v2006_v43 }
 0x405   : > { %v1959_v12 = vsel %vm539_vm3, %v1956_v19, %v1958_v62  ;;  %v1960_v44 = vsel %vm539_vm3, %v1958_v62, %v1956_v19  ;;  %v2052_v46 = vand.u32 4294901760, %v2027_v40  ;;  %v2050_v5 = vand.u32 4294901760, %v2028_v50 }
 0x406   : > { %v1961_v58 = vmul.f32 %v1960_v44, %v4147_v28  ;;  %v1962_v41 = vmul.f32 %v1959_v12, %v4150_v31 }
 0x407   : > { %v1972_v18 = vpop.permute.xlu1 %1971  ;;  %v4664_v54 = vsub.f32 %v2027_v40, %v2052_v46  ;;  %v4673_v37 = vsub.f32 %v2028_v50, %v2050_v5  ;;  %v2127_v50 = vand.u32 4294901760, %v4669_v56 }
 0x408   : > { %v2029_v13 = vsel %vm661_vm4, %v1961_v58, %v2011_v51  ;;  %v1974_v1 = vpop.permute.xlu0 %1973  ;;  %v2030_v7 = vsel %vm661_vm4, %v1962_v41, %v2012_v45 }
 0x409   : > { %v2056_v49 = vand.u32 4294901760, %v2029_v13  ;;  %v1975_v9 = vsel %vm573_vm5, %v1972_v18, %v1974_v1  ;;  %v1976_v48 = vsel %vm573_vm5, %v1974_v1, %v1972_v18  ;;  %v2054_v47 = vand.u32 4294901760, %v2030_v7 }
 0x40a   : > { %v1977_v34 = vmul.f32 %v1975_v9, %v4154_v32  ;;  %v1978_v52 = vmul.f32 %v1976_v48, %v4172_v42  ;;  %v2138_v62 = vand.u32 4294901760, %v4673_v37  ;;  %v2144_v51 = vand.u32 4294901760, %v4664_v54 }
 0x40b   : > { %v1988_v2 = vpop.permute.xlu1 %1987  ;;  %v4671_v38 = vpack.c.bf16 %v2054_v47, %v2050_v5  ;;  %v4675_v53 = vsub.f32 %v2030_v7, %v2054_v47  ;;  %v4677_v57 = vpack.c.bf16 %v2056_v49, %v2052_v46  ;;  %v4679_v10 = vsub.f32 %v2029_v13, %v2056_v49 }
 0x40c   : > { %v2017_v17 = vrot.slane %v1977_v34, 4  ;;  %v2018_v25 = vrot.slane %v1978_v52, 4  ;;  %v1990_v30 = vpop.permute.xlu0 %1989  ;;  %v2139_v7 = vsub.f32 %v4673_v37, %v2138_v62  ;;  %v2128_v49 = vsub.f32 %v4669_v56, %v2127_v50 }
 0x40d   : > { %v1991_v33 = vsel %vm607_vm7, %v1988_v2, %v1990_v30  ;;  %v1992_v21 = vsel %vm607_vm7, %v1990_v30, %v1988_v2  ;;  %3543 = vmatprep.subr.bf16.mxu0 %v4671_v38  ;;  %v2150_v55 = vand.u32 4294901760, %v4675_v53  ;;  %v2145_v9 = vsub.f32 %v4664_v54, %v2144_v51 }
 0x40e   : > { %v2031_v43 = vsel %vm661_vm4, %v4587_v14, %v2017_v17  ;;  %v1993_v29 = vmul.f32 %v1991_v33, %v4188_v59  ;;  %v1994_v0 = vmul.f32 %v1992_v21, %v4194_v4  ;;  %3545 = vmatpush1.bf16.msra.mxu0 %v4677_v57  ;;  %v2032_v16 = vsel %vm661_vm4, %v4589_v63, %v2018_v25 }
 0x40f   : > { %v1980_v19 = vpop.permute.xlu1 %1979  ;;  %v2058_v40 = vand.u32 4294901760, %v2032_v16  ;;  %v2060_v12 = vand.u32 4294901760, %v2031_v43  ;;  %v2156_v14 = vand.u32 4294901760, %v4679_v10  ;;  %v2151_v63 = vsub.f32 %v4675_v53, %v2150_v55 }
 0x410   : > { %v1982_v44 = vpop.permute.xlu0 %1981  ;;  %v2023_v41 = vrot.slane %v1993_v29, 4  ;;  %v2024_v18 = vrot.slane %v1994_v0, 4 }
 0x411   : > { %v1983_v45 = vsel %vm590_vm8, %v1980_v19, %v1982_v44  ;;  %v1984_v46 = vsel %vm590_vm8, %v1982_v44, %v1980_v19  ;;  %v4702_v58 = vsub.f32 %v2032_v16, %v2058_v40  ;;  %v4718_v48 = vsub.f32 %v2031_v43, %v2060_v12 }
 0x412   : > { %v1985_v5 = vmul.f32 %v1983_v45, %v4204_v11  ;;  %v1986_v13 = vmul.f32 %v1984_v46, %v4220_v36  ;;  %v2152_v29 = vand.u32 4294901760, %v2151_v63  ;;  %v2157_v0 = vsub.f32 %v4679_v10, %v2156_v14 }
 0x413   : > { %v1996_v1 = vpop.permute.xlu1 %1995  ;;  %v5134_v2 = vand.u32 4294901760, %v4702_v58 }
 0x414   : > { %v2033_v47 = vsel %vm661_vm4, %v1985_v5, %v2023_v41  ;;  %v1998_v34 = vpop.permute.xlu0 %1997  ;;  %v2034_v52 = vsel %vm661_vm4, %v1986_v13, %v2024_v18  ;;  %v2140_v5 = vand.u32 4294901760, %v2139_v7  ;;  %v2129_v13 = vand.u32 4294901760, %v2128_v49 }
 0x415   : > { %v2064_v17 = vand.u32 4294901760, %v2033_v47  ;;  %v1999_v25 = vsel %vm624_vm9, %v1996_v1, %v1998_v34  ;;  %v2000_v30 = vsel %vm624_vm9, %v1998_v34, %v1996_v1  ;;  %v2062_v33 = vand.u32 4294901760, %v2034_v52 }
 0x416   : > { %v2001_v21 = vmul.f32 %v4257_v60, %v1999_v25  ;;  %v2002_v43 = vmul.f32 %v4262_v61, %v2000_v30  ;;  %v2163_v60 = vsub.f32 %v4702_v58, %v5134_v2  ;;  %v5136_v61 = vand.u32 4294901760, %v4718_v48 }
 0x417   : > { %v4732_v16 = vsub.f32 %v2033_v47, %v2064_v17  ;;  %v4734_v19 = vpack.c.bf16 %v2062_v33, %v2058_v40  ;;  %v4736_v44 = vsub.f32 %v2034_v52, %v2062_v33  ;;  %v4738_v45 = vpack.c.bf16 %v2064_v17, %v2060_v12 }
 0x418   : > { %v2045_v46 = vsel %vm661_vm4, %v2001_v21, 0  ;;  %v2048_v41 = vsel %vm661_vm4, %v2002_v43, 0  ;;  %v2158_v1 = vand.u32 4294901760, %v2157_v0  ;;  %v2146_v25 = vand.u32 4294901760, %v2145_v9 }
 0x419   : > { %v4746_v63 = vand.u32 4294901760, %v2048_v41  ;;  %v4748_v18 = vand.u32 4294901760, %v2045_v46  ;;  %3547 = vmatprep.subr.bf16.mxu0 %v4734_v19  ;;  %v2174_v40 = vand.u32 4294901760, %v4736_v44  ;;  %v5135_v12 = vand.u32 4294901760, %v4732_v16 }
 0x41a   : > { %3549 = vmatpush1.bf16.msra.mxu0 %v4738_v45  ;;  %v2169_v30 = vsub.f32 %v4718_v48, %v5136_v61  ;;  %v3550_v7 = vpack.c.bf16 %v2152_v29, %v2140_v5  ;;  %v2164_v49 = vand.u32 4294901760, %v2163_v60  ;;  %v3552_v43 = vpack.c.bf16 %v2158_v1, %v2146_v25 }
 0x41b   : > { %v2185_v47 = vsub.f32 %v2048_v41, %v4746_v63  ;;  %v2191_v34 = vsub.f32 %v2045_v46, %v4748_v18  ;;  %2067 = vmatprep.subr.mxu0 %v4746_v63  ;;  %v2175_v52 = vsub.f32 %v4736_v44, %v2174_v40  ;;  %v2181_v17 = vsub.f32 %v4732_v16, %v5135_v12 }
 0x41c   : > { %v2170_v12 = vand.u32 4294901760, %v2169_v30  ;;  %v3558_v5 = vpack.c.bf16 %v4675_v53, %v4673_v37  ;;  %v3562_v1 = vpack.c.bf16 %v4736_v44, %v4702_v58  ;;  %v3574_v44 = vpack.c.bf16 %v2150_v55, %v2138_v62  ;;  %v492_v30 = vld [vmem:[%s5111_s10] sm:$0xf] }
 0x41d   : > { %v2176_v33 = vand.u32 4294901760, %v2175_v52  ;;  %v2186_v21 = vand.u32 4294901760, %v2185_v47  ;;  %v2182_v0 = vand.u32 4294901760, %v2181_v17  ;;  %v2192_v46 = vand.u32 4294901760, %v2191_v34 }
 0x41e   : > { %2069 = vmatpush1.msra.mxu0 %v4748_v18  ;;  %v5158_v37 = vand.u32 4294901760, %v4718_v48  ;;  %v5159_v53 = vand.u32 4294901760, %v4732_v16 }
 0x41f   : > { %3551 = vmatprep.subr.bf16.mxu0 %v3550_v7  ;;  %2130 = vmatmul.mubr.f32.vlgmr.msra.gmra.mrb[2].mxu0 %v2129_v13  ;;  %v3554_v41 = vpack.c.bf16 %v2176_v33, %v2164_v49  ;;  %v2187_v2 = vsub.f32 %v2185_v47, %v2186_v21  ;;  %v3556_v9 = vpack.c.bf16 %v2182_v0, %v2170_v12  ;;  %v5157_v12 = vand.u32 4294901760, %v4702_v58  ;;  %v493_v49 = vld [vmem:[%s5112_s11] sm:$0xf] }
 0x420   : > { %3553 = vmatpush1.bf16.msra.mxu0 %v3552_v43  ;;  %2250 = vmatprep.mubr.f32.mxu0 %v3857_v3  ;;  %v2193_v61 = vsub.f32 %v2191_v34, %v2192_v46  ;;  %v3560_v13 = vpack.c.bf16 %v4679_v10, %v4664_v54  ;;  %v3580_v55 = vpack.c.bf16 %v5159_v53, %v5158_v37 }
 0x421   : > { %3555 = vmatprep.subr.bf16.mxu0 %v3554_v41  ;;  %v2188_v29 = vand.u32 4294901760, %v2187_v2  ;;  %v3564_v2 = vpack.c.bf16 %v4732_v16, %v4718_v48 }
 0x422   : > { %v2194_v60 = vand.u32 4294901760, %v2193_v61  ;;  %v3576_v61 = vpack.c.bf16 %v2156_v14, %v2144_v51  ;;  %v490_v14 = vld [vmem:[%s5109_s8] sm:$0xf] }
 0x424   : > { %3557 = vmatpush1.bf16.msra.mxu0 %v3556_v9  ;;  %v2039_v54 = vpop.permute.xlu1 %2038 }
 0x425   : > { %2189 = vmatprep.subr.mxu0 %v2188_v29 }
 0x428   : > { %2195 = vmatpush1.msra.mxu0 %v2194_v60 }
 0x429   : > { %3559 = vmatprep.subr.bf16.mxu0 %v3558_v5  ;;  %2252 = vmatmul.mubr.f32.vlgmr.msra.gmra.mrb[2].mxu0 %v4654_v6 }
 0x42a   : > { %3561 = vmatpush1.bf16.msra.mxu0 %v3560_v13  ;;  %2342 = vmatprep.mubr.f32.mxu0 %v3857_v3 }
 0x42b   : > { %3563 = vmatprep.subr.bf16.mxu0 %v3562_v1 }
 0x42e   : > { %3565 = vmatpush1.bf16.msra.mxu0 %v3564_v2 }
 0x42f   : > { %2284 = vmatprep.subr.mxu0 %v2185_v47  ;;  %v3578_v47 = vpack.c.bf16 %v2174_v40, %v5157_v12 }
 0x432   : > { %2287 = vmatpush1.msra.mxu0 %v2191_v34  ;;  %v491_v34 = vld [vmem:[#allocation2] sm:$0x1] }
 0x433   : > { %3567 = vmatprep.subr.bf16.mxu0 %v4671_v38  ;;  %2345 = vmatmul.mubr.f32.vlgmr.msra.gmra.mrb[2].mxu0 %v4669_v56 }
 0x434   : > { %3569 = vmatpush1.bf16.msra.mxu0 %v4677_v57  ;;  %2425 = vmatprep.mubr.f32.mxu0 %v3857_v3 }
 0x435   : > { %3571 = vmatprep.subr.bf16.mxu0 %v4734_v19 }
 0x438   : > { %3573 = vmatpush1.bf16.msra.mxu0 %v4738_v45 }
 0x439   : > { %2368 = vmatprep.subr.mxu0 %v4746_v63 }
 0x43c   : > { %2370 = vmatpush1.msra.mxu0 %v4748_v18 }
 0x43d   : > { %3575 = vmatprep.subr.bf16.mxu0 %v3574_v44  ;;  %2429 = vmatmul.mubr.f32.vlgmr.msra.gmra.mrb[2].mxu0 %v2127_v50 }
 0x43e   : > { %3577 = vmatpush1.bf16.msra.mxu0 %v3576_v61  ;;  %2529 = vmatprep.mubr.f32.mxu0 %v3857_v3 }
 0x43f   : > { %3579 = vmatprep.subr.bf16.mxu0 %v3578_v47 }
 0x442   : > { %3581 = vmatpush1.bf16.msra.mxu0 %v3580_v55 }
 0x443   : > { %2470 = vmatprep.subr.mxu0 %v2186_v21 }
 0x446   : > { %2474 = vmatpush1.msra.mxu0 %v2192_v46 }
 0x447   : > { %3583 = vmatprep.subr.bf16.mxu0 %v4671_v38  ;;  %2531 = vmatmul.mubr.f32.vlgmr.msra.gmra.mrb[2].mxu0 %v4654_v6 }
 0x448   : > { %3585 = vmatpush1.bf16.msra.mxu0 %v4677_v57  ;;  %2611 = vmatprep.mubr.f32.mxu0 %v3857_v3 }
 0x449   : > { %3587 = vmatprep.subr.bf16.mxu0 %v4734_v19 }
 0x44c   : > { %3589 = vmatpush1.bf16.msra.mxu0 %v4738_v45 }
 0x44d   : > { %2554 = vmatprep.subr.mxu0 %v4746_v63 }
 0x450   : > { %2556 = vmatpush1.msra.mxu0 %v4748_v18 }
 0x451   : > { %2613 = vmatmul.mubr.f32.vlgmr.msra.gmra.mrb[2].mxu0 %v4654_v6 }
 0x524   : > { %v2614_v56 = vpop.f32.mrb[2].mxu0 }
 0x525   : > { %v3642_v10 = vadd.f32 %v2614_v56, %v2039_v54  ;;  %v2616_v38 = vpop.f32.mrb[3].mxu0 }
 0x526   : > { %v3643_v62 = vadd.f32 %v2616_v38, %v2039_v54 }
 0x527   : > { %v2619_v50 = vsel %vm661_vm4, %v3642_v10, 0.0 }
 0x528   : > { %v2620_v57 = vsel %vm661_vm4, %v3643_v62, 0.0 }
 0x529   : > { %v2621_v51 = vadd.f32 %v2620_v57, %v2619_v50 }
 0x52b   : > { %2622 = vadd.xlane.f32.xlu0 %v2621_v51 }
 0x5b8   : > { %v2623_v58 = vpop.xlane.xlu0 %2622 }
 0x5b9   : > { %v2624_v48 = vmul.f32 0.00390625, %v2623_v58 }
 0x5bb   : > { %v2625_v16 = vmul.f32 %v2624_v48, %v490_v14 }
 0x5bd   : > { %v2627_v6 = vsel %vm2626_vm10, %v2625_v16, 0.0 }
 0x5be   : > { %v2628_v19 = vrot.slane %v2627_v6, 4 }
 0x5c0   : > { %v2629_v45 = vadd.f32 %v2628_v19, %v2627_v6 }
 0x5c2   : > { %v2630_v63 = vrot.slane %v2629_v45, 2 }
 0x5c4   : > { %v2631_v18 = vadd.f32 %v2630_v63, %v2629_v45 }
 0x5c6   : > { %v2632_v40 = vrot.slane %v2631_v18, 1 }
 0x5c8   : > { %v2633_v52 = vadd.f32 %v2632_v40, %v2631_v18 }
 0x5ca   : > { %v2634_v17 = vadd.f32 %v2633_v52, %v491_v34 }
 0x5cc   : > { %v2635_v25 = vmax.f32 %v2634_v17, 0.0 }
 0x5ce   : > { %v2639_v7 = vrot.slane %v2635_v25, %v4115_v15 }
 0x5d0   : > { %v2640_v33 = vmul.f32 %v2639_v7, %v492_v30 }
 0x5d2   : > { %v2642_v21 = vadd.f32 %v2640_v33, %v493_v49 }
 0x5d4   : > { %v2643_v43 = vsub.f32 0.0, %v2642_v21 }
 0x5d6   : > { %v2644_v0 = vmul.f32 1.442695, %v2643_v43 }
 0x5d8   : > { %3745 = vpow2.f32 %v2644_v0 }
 0x5e2   : > { %v3746_v46 = vpop.eup %3745 }
 0x5e3   : > { %v2646_v41 = vadd.f32 1.0, %v3746_v46 }
 0x5e5   : > { %3747 = vrcp.f32 %v2646_v41 }
 0x5ef   : > { %v3748_v9 = vpop.eup %3747 }
 0x5f0   : > { %v2649_v29 = vmul.f32 %v3748_v9, %v2624_v48 }
 0x5f2   : > { %2652 = vperm.xlu1 %3743, %v2649_v29  }
 0x671   : > { %v2653_v60 = vpop.permute.xlu1 %2652 }
 0x672   : > { %v4823_v5 = vadd.f32 %v4363_v39, %v2653_v60  ;;  %v4826_v15 = vadd.f32 %v4369_v35, %v2653_v60  ;;  %v2754_v39 = vld [vmem:[%s5114_s13] sm:$0xf] }
 0x674   : > { %2676 = vrot.lane.b32.xlu0 %v4826_v15, %s3853_s25  ;;  %2666 = vrot.lane.b32.xlu1 %v4823_v5, %s3851_s23 }
 0x678   : > { %2714 = vrot.lane.b32.xlu0 %v4823_v5, %s3858_s17  ;;  %2668 = vrot.lane.b32.xlu1 %v4826_v15, %s3851_s23  ;;  %s5160_s23 = smov 112  }
 0x67c   : > { %2757 = vperm.xlu0 %3742, %v2754_v39   ;;  %2682 = vrot.lane.b32.xlu1 %v4823_v5, %s3850_s20 }
 0x680   : > { %2684 = vrot.lane.b32.xlu1 %v4826_v15, %s3850_s20 }
 0x684   : > { %2658 = vrot.lane.b32.xlu1 %v4823_v5, %s3852_s21 }
 0x688   : > { %2660 = vrot.lane.b32.xlu1 %v4826_v15, %s3852_s21  ;;  %s5057_s21 = scalar_lea.hbm %s5115_s14, %s3445_s24 }
 0x68c   : > { %2674 = vrot.lane.b32.xlu1 %v4823_v5, %s3853_s25  ;;  %s3344_s25 = scalar_lea.sflag [#allocation5], %s4044_s29 }
 0x690   : > { %2690 = vrot.lane.b32.xlu1 %v4823_v5, %s3854_s28 }
 0x694   : > { %2692 = vrot.lane.b32.xlu1 %v4826_v15, %s3854_s28  ;;  %s3781_s28 = scalar_lea.vmem %s5059_s15, 128 }
 0x695   : > { %p3782_p6 = scmp.ne.s32.totalorder %s5059_s15, %s3781_s28 }
 0x697   : > { %p3783_p12 = pnand %p3782_p6, %p5162_p11 }
 0x698   : > { %2706 = vrot.lane.b32.xlu1 %v4823_v5, %s5160_s23 }
 0x699   : > { %p3784_p13 = pneg %p3783_p12 }
 0x69c   : > { %2708 = vrot.lane.b32.xlu1 %v4826_v15, %s5160_s23 }
 0x6a0   : > { %2698 = vrot.lane.b32.xlu1 %v4823_v5, %s5151_s19 }
 0x6a4   : > { %2700 = vrot.lane.b32.xlu1 %v4826_v15, %s5151_s19 }
 0x6a8   : > { %2716 = vrot.lane.b32.xlu1 %v4826_v15, %s3858_s17  ;;  %s3785_s17 = sshll.u32 %s3860_s9, 4  ;;  %s3786_s17 = int_to_ptr.vmem [resolvable:$false] %s3785_s17 }
 0x6a9   : > { %s3787_s19 = scalar_lea.vmem %s3786_s17, 256  ;;  %p3788_p7 = scmp.lt.s32.totalorder %s5059_s15, %s3786_s17 }
 0x6aa   : > { %p3789_p10 = scmp.lt.s32.totalorder %s3787_s19, %s3781_s28 }
 0x6ac   : > { %p3790_p2 = por %p3789_p10, %p3788_p7 }
 0x6ae   : > { %p3791_p4 = pnand %p3790_p2, %p3784_p13 }
 0x6e6   : > { %v2667_v35 = vpop.permute.xlu1 %2666  ;;  %v2677_v51 = vpop.permute.xlu0 %2676 }
 0x6ea   : > { %v2669_v13 = vpop.permute.xlu1 %2668 }
 0x6eb   : > { %v2670_v61 = vsel %vm522_vm2, %v2667_v35, %v2669_v13  ;;  %v2671_v12 = vsel %vm522_vm2, %v2669_v13, %v2667_v35 }
 0x6ec   : > { %v2672_v53 = vmul.f32 %v2671_v12, %v4131_v23  ;;  %v2673_v55 = vmul.f32 %v2670_v61, %v4134_v24 }
 0x6ee   : > { %v2683_v1 = vpop.permute.xlu1 %2682  ;;  %v2724_v14 = vrot.slane %v2672_v53, 4  ;;  %v2725_v23 = vrot.slane %v2673_v55, 4 }
 0x6f2   : > { %v2685_v2 = vpop.permute.xlu1 %2684 }
 0x6f3   : > { %v2686_v47 = vsel %vm556_vm0, %v2683_v1, %v2685_v2  ;;  %v2687_v37 = vsel %vm556_vm0, %v2685_v2, %v2683_v1 }
 0x6f4   : > { %v2688_v56 = vmul.f32 %v2687_v37, %v4121_v20  ;;  %v2689_v10 = vmul.f32 %v2686_v47, %v4128_v22 }
 0x6f6   : > { %v2659_v44 = vpop.permute.xlu1 %2658  ;;  %v2730_v24 = vrot.slane %v2688_v56, 4  ;;  %v2731_v48 = vrot.slane %v2689_v10, 4 }
 0x6fa   : > { %v2661_v54 = vpop.permute.xlu1 %2660 }
 0x6fb   : > { %v2662_v38 = vsel %vm505_vm1, %v2659_v44, %v2661_v54  ;;  %v2663_v62 = vsel %vm505_vm1, %v2661_v54, %v2659_v44 }
 0x6fc   : > { %v2664_v50 = vmul.f32 %v2663_v62, %v4140_v26  ;;  %v2665_v57 = vmul.f32 %v2662_v38, %v4144_v27 }
 0x6fe   : > { %v2675_v58 = vpop.permute.xlu1 %2674  ;;  %v2746_v16 = vsel %vm661_vm4, %v2664_v50, %v2724_v14  ;;  %v2747_v27 = vsel %vm661_vm4, %v2665_v57, %v2725_v23 }
 0x6ff   : > { %v2678_v20 = vsel %vm539_vm3, %v2675_v58, %v2677_v51  ;;  %v2679_v22 = vsel %vm539_vm3, %v2677_v51, %v2675_v58  ;;  %v2771_v18 = vand.u32 4294901760, %v2746_v16  ;;  %v2769_v34 = vand.u32 4294901760, %v2747_v27 }
 0x700   : > { %v2680_v6 = vmul.f32 %v2679_v22, %v4147_v28  ;;  %v2681_v26 = vmul.f32 %v2678_v20, %v4150_v31  ;;  %v2657_v28 = vld [vmem:[%s5113_s12] sm:$0xf] }
 0x701   : > { %v2761_v33 = vsel %vm676_vm6, %v2657_v28, 0  ;;  %v4918_v35 = vsub.f32 %v2747_v27, %v2769_v34 }
 0x702   : > { %v2748_v19 = vsel %vm661_vm4, %v2680_v6, %v2730_v24  ;;  %v2691_v45 = vpop.permute.xlu1 %2690  ;;  %v2749_v63 = vsel %vm661_vm4, %v2681_v26, %v2731_v48  ;;  %v4907_v46 = vand.u32 4294901760, %v2761_v33  ;;  %v2715_v24 = vpop.permute.xlu0 %2714 }
 0x703   : > { %v2775_v40 = vand.u32 4294901760, %v2748_v19  ;;  %v2773_v52 = vand.u32 4294901760, %v2749_v63  ;;  %v2857_v37 = vand.u32 4294901760, %v4918_v35 }
 0x704   : > { %v4914_v39 = vsub.f32 %v2761_v33, %v4907_v46 }
 0x705   : > { %v4891_v17 = vpack.c.bf16 %v2773_v52, %v2769_v34  ;;  %v4893_v25 = vpack.c.bf16 %v2775_v40, %v2771_v18  ;;  %v4909_v29 = vsub.f32 %v2749_v63, %v2773_v52  ;;  %v4924_v44 = vsub.f32 %v2748_v19, %v2775_v40  ;;  %v3749_v19 = vld [vmem:[%s5102_s1 + $0x10] ss:$0 sm:$0xff]  ;;  %v3750_v63 = vld [vmem:[%s5102_s1 + $0x18] ss:$0 sm:$0xff] }
 0x706   : > { %v2693_v30 = vpop.permute.xlu1 %2692  ;;  %v2846_v53 = vand.u32 4294901760, %v4914_v39  ;;  %v2858_v14 = vsub.f32 %v4918_v35, %v2857_v37 }
 0x707   : > { %v2695_v31 = vsel %vm573_vm5, %v2693_v30, %v2691_v45  ;;  %3591 = vmatprep.subr.bf16.mxu1 %v4891_v17  ;;  %v2694_v7 = vsel %vm573_vm5, %v2691_v45, %v2693_v30  ;;  %v2869_v61 = vand.u32 4294901760, %v4909_v29 }
 0x708   : > { %v2697_v49 = vmul.f32 %v2695_v31, %v4172_v42  ;;  %3593 = vmatpush1.bf16.msra.mxu1 %v4893_v25  ;;  %v2696_v43 = vmul.f32 %v2694_v7, %v4154_v32  ;;  %v4916_v42 = vsub.f32 %v2746_v16, %v2771_v18  ;;  %v2847_v23 = vsub.f32 %v4914_v39, %v2846_v53 }
 0x70a   : > { %v2707_v21 = vpop.permute.xlu1 %2706  ;;  %v2737_v0 = vrot.slane %v2697_v49, 4  ;;  %v2736_v9 = vrot.slane %v2696_v43, 4  ;;  %v2863_v55 = vand.u32 4294901760, %v4916_v42 }
 0x70c   : > { %v2751_v60 = vsel %vm661_vm4, %v4826_v15, %v2737_v0  ;;  %v2750_v15 = vsel %vm661_vm4, %v4823_v5, %v2736_v9  ;;  %v2864_v58 = vsub.f32 %v4916_v42, %v2863_v55  ;;  %v2859_v9 = vand.u32 4294901760, %v2858_v14 }
 0x70d   : > { %v2777_v2 = vand.u32 4294901760, %v2751_v60  ;;  %v2779_v54 = vand.u32 4294901760, %v2750_v15 }
 0x70e   : > { %v2709_v41 = vpop.permute.xlu1 %2708 }
 0x70f   : > { %v2710_v32 = vsel %vm607_vm7, %v2707_v21, %v2709_v41  ;;  %v2711_v13 = vsel %vm607_vm7, %v2709_v41, %v2707_v21  ;;  %v4934_v10 = vsub.f32 %v2751_v60, %v2777_v2  ;;  %v4955_v48 = vsub.f32 %v2750_v15, %v2779_v54 }
 0x710   : > { %v2712_v12 = vmul.f32 %v2710_v32, %v4188_v59  ;;  %v2713_v47 = vmul.f32 %v2711_v13, %v4194_v4  ;;  %v2870_v59 = vsub.f32 %v4909_v29, %v2869_v61  ;;  %v2875_v4 = vand.u32 4294901760, %v4924_v44 }
 0x711   : > { %v2881_v22 = vand.u32 4294901760, %v4934_v10  ;;  %v2887_v33 = vand.u32 4294901760, %v4955_v48  ;;  %v2848_v60 = vand.u32 4294901760, %v2847_v23 }
 0x712   : > { %v2699_v1 = vpop.permute.xlu1 %2698  ;;  %v2742_v62 = vrot.slane %v2712_v12, 4  ;;  %v2743_v50 = vrot.slane %v2713_v47, 4  ;;  %v2871_v40 = vand.u32 4294901760, %v2870_v59  ;;  %v2876_v34 = vsub.f32 %v4924_v44, %v2875_v4 }
 0x713   : > { %v2882_v49 = vsub.f32 %v4934_v10, %v2881_v22  ;;  %v2865_v12 = vand.u32 4294901760, %v2864_v58  ;;  %v2888_v47 = vsub.f32 %v4955_v48, %v2887_v33 }
 0x714   : > { %v2877_v32 = vand.u32 4294901760, %v2876_v34 }
 0x715   : > { %v2889_v14 = vand.u32 4294901760, %v2888_v47 }
 0x716   : > { %v2701_v56 = vpop.permute.xlu1 %2700  ;;  %v3600_v59 = vpack.c.bf16 %v2877_v32, %v2865_v12 }
 0x717   : > { %v2702_v38 = vsel %vm590_vm8, %v2699_v1, %v2701_v56  ;;  %v2703_v5 = vsel %vm590_vm8, %v2701_v56, %v2699_v1  ;;  %v2883_v56 = vand.u32 4294901760, %v2882_v49 }
 0x718   : > { %v2704_v57 = vmul.f32 %v2702_v38, %v4204_v11  ;;  %v2705_v51 = vmul.f32 %v2703_v5, %v4220_v36 }
 0x71a   : > { %v2752_v20 = vsel %vm661_vm4, %v2704_v57, %v2742_v62  ;;  %v2717_v11 = vpop.permute.xlu1 %2716  ;;  %v2753_v36 = vsel %vm661_vm4, %v2705_v51, %v2743_v50 }
 0x71b   : > { %v2783_v16 = vand.u32 4294901760, %v2752_v20  ;;  %v2718_v6 = vsel %vm624_vm9, %v2715_v24, %v2717_v11  ;;  %v2719_v26 = vsel %vm624_vm9, %v2717_v11, %v2715_v24  ;;  %v2781_v27 = vand.u32 4294901760, %v2753_v36 }
 0x71c   : > { %v2720_v45 = vmul.f32 %v3749_v19, %v2718_v6  ;;  %v2721_v18 = vmul.f32 %v3750_v63, %v2719_v26  ;;  %v3606_v11 = vpack.c.bf16 %v4909_v29, %v4918_v35  ;;  %v3622_v26 = vpack.c.bf16 %v2869_v61, %v2857_v37 }
 0x71d   : > { %v4973_v52 = vsub.f32 %v2752_v20, %v2783_v16  ;;  %v4975_v8 = vpack.c.bf16 %v2781_v27, %v2777_v2  ;;  %v4977_v30 = vsub.f32 %v2753_v36, %v2781_v27  ;;  %v4979_v28 = vpack.c.bf16 %v2783_v16, %v2779_v54 }
 0x71e   : > { %v2764_v31 = vsel %vm661_vm4, %v2720_v45, 0  ;;  %v2767_v7 = vsel %vm661_vm4, %v2721_v18, 0  ;;  %v3598_v54 = vpack.c.bf16 %v2871_v40, %v2859_v9  ;;  %v3608_v36 = vpack.c.bf16 %v4924_v44, %v4916_v42 }
 0x71f   : > { %v4987_v21 = vand.u32 4294901760, %v2767_v7  ;;  %v4989_v43 = vand.u32 4294901760, %v2764_v31  ;;  %3595 = vmatprep.subr.bf16.mxu1 %v4975_v8  ;;  %v2893_v0 = vand.u32 4294901760, %v4977_v30  ;;  %v2899_v41 = vand.u32 4294901760, %v4973_v52 }
 0x720   : > { %3597 = vmatpush1.bf16.msra.mxu1 %v4979_v28  ;;  %v3610_v16 = vpack.c.bf16 %v4977_v30, %v4934_v10  ;;  %v3612_v6 = vpack.c.bf16 %v4973_v52, %v4955_v48  ;;  %v3624_v27 = vpack.c.bf16 %v2875_v4, %v2863_v55 }
 0x721   : > { %v2904_v13 = vsub.f32 %v2767_v7, %v4987_v21  ;;  %v2910_v1 = vsub.f32 %v2764_v31, %v4989_v43  ;;  %2786 = vmatprep.subr.mxu1 %v4987_v21  ;;  %v2894_v2 = vsub.f32 %v4977_v30, %v2893_v0  ;;  %v2900_v15 = vsub.f32 %v4973_v52, %v2899_v41 }
 0x722   : > { %v3626_v19 = vpack.c.bf16 %v2893_v0, %v2881_v22  ;;  %v3628_v29 = vpack.c.bf16 %v2899_v41, %v2887_v33 }
 0x723   : > { %v2895_v38 = vand.u32 4294901760, %v2894_v2  ;;  %v2905_v5 = vand.u32 4294901760, %v2904_v13  ;;  %v2901_v62 = vand.u32 4294901760, %v2900_v15  ;;  %v2911_v50 = vand.u32 4294901760, %v2910_v1 }
 0x724   : > { %2788 = vmatpush1.msra.mxu1 %v4989_v43 }
 0x725   : > { %3599 = vmatprep.subr.bf16.mxu1 %v3598_v54  ;;  %2849 = vmatmul.mubr.f32.vlgmr.msra.gmra.mrb[2].mxu1 %v2848_v60  ;;  %v3602_v57 = vpack.c.bf16 %v2895_v38, %v2883_v56  ;;  %v2906_v51 = vsub.f32 %v2904_v13, %v2905_v5  ;;  %v3604_v23 = vpack.c.bf16 %v2901_v62, %v2889_v14 }
 0x726   : > { %3601 = vmatpush1.bf16.msra.mxu1 %v3600_v59  ;;  %2969 = vmatprep.mubr.f32.mxu1 %v3857_v3  ;;  %v2912_v58 = vsub.f32 %v2910_v1, %v2911_v50 }
 0x727   : > { %3603 = vmatprep.subr.bf16.mxu1 %v3602_v57  ;;  %v2907_v24 = vand.u32 4294901760, %v2906_v51 }
 0x728   : > { %v2913_v20 = vand.u32 4294901760, %v2912_v58 }
 0x72a   : > { %3605 = vmatpush1.bf16.msra.mxu1 %v3604_v23 }
 0x72b   : > { %2908 = vmatprep.subr.mxu1 %v2907_v24 }
 0x72e   : > { %2914 = vmatpush1.msra.mxu1 %v2913_v20 }
 0x72f   : > { %3607 = vmatprep.subr.bf16.mxu1 %v3606_v11  ;;  %2971 = vmatmul.mubr.f32.vlgmr.msra.gmra.mrb[2].mxu1 %v4907_v46 }
 0x730   : > { %3609 = vmatpush1.bf16.msra.mxu1 %v3608_v36  ;;  %3061 = vmatprep.mubr.f32.mxu1 %v3857_v3 }
 0x731   : > { %3611 = vmatprep.subr.bf16.mxu1 %v3610_v16 }
 0x734   : > { %3613 = vmatpush1.bf16.msra.mxu1 %v3612_v6 }
 0x735   : > { %3003 = vmatprep.subr.mxu1 %v2904_v13 }
 0x738   : > { %3006 = vmatpush1.msra.mxu1 %v2910_v1 }
 0x739   : > { %3615 = vmatprep.subr.bf16.mxu1 %v4891_v17  ;;  %3064 = vmatmul.mubr.f32.vlgmr.msra.gmra.mrb[2].mxu1 %v4914_v39  ;;  %v2758_v39 = vpop.permute.xlu0 %2757 }
 0x73a   : > { %3617 = vmatpush1.bf16.msra.mxu1 %v4893_v25  ;;  %3144 = vmatprep.mubr.f32.mxu1 %v3857_v3 }
 0x73b   : > { %3619 = vmatprep.subr.bf16.mxu1 %v4975_v8 }
 0x73e   : > { %3621 = vmatpush1.bf16.msra.mxu1 %v4979_v28 }
 0x73f   : > { %3087 = vmatprep.subr.mxu1 %v4987_v21 }
 0x742   : > { %3089 = vmatpush1.msra.mxu1 %v4989_v43 }
 0x743   : > { %3623 = vmatprep.subr.bf16.mxu1 %v3622_v26  ;;  %3148 = vmatmul.mubr.f32.vlgmr.msra.gmra.mrb[2].mxu1 %v2846_v53 }
 0x744   : > { %3625 = vmatpush1.bf16.msra.mxu1 %v3624_v27  ;;  %3248 = vmatprep.mubr.f32.mxu1 %v3857_v3 }
 0x745   : > { %3627 = vmatprep.subr.bf16.mxu1 %v3626_v19 }
 0x748   : > { %3629 = vmatpush1.bf16.msra.mxu1 %v3628_v29 }
 0x749   : > { %3189 = vmatprep.subr.mxu1 %v2905_v5 }
 0x74c   : > { %3193 = vmatpush1.msra.mxu1 %v2911_v50 }
 0x74d   : > { %3631 = vmatprep.subr.bf16.mxu1 %v4891_v17  ;;  %3250 = vmatmul.mubr.f32.vlgmr.msra.gmra.mrb[2].mxu1 %v4907_v46 }
 0x74e   : > { %3633 = vmatpush1.bf16.msra.mxu1 %v4893_v25  ;;  %3330 = vmatprep.mubr.f32.mxu1 %v3857_v3 }
 0x74f   : > { %3635 = vmatprep.subr.bf16.mxu1 %v4975_v8 }
 0x752   : > { %3637 = vmatpush1.bf16.msra.mxu1 %v4979_v28 }
 0x753   : > { %3273 = vmatprep.subr.mxu1 %v4987_v21 }
 0x756   : > { %3275 = vmatpush1.msra.mxu1 %v4989_v43 }
 0x757   : > { %3332 = vmatmul.mubr.f32.vlgmr.msra.gmra.mrb[2].mxu1 %v4907_v46 }
 0x82a   : > { %v3333_v17 = vpop.f32.mrb[2].mxu1 }
 0x82b   : > { %v3644_v42 = vadd.f32 %v3333_v17, %v2758_v39  ;;  %v3335_v35 = vpop.f32.mrb[3].mxu1 }
 0x82c   : > { %v3645_v3 = vadd.f32 %v3335_v35, %v2758_v39 }
 0x82e   : > { %v3340_v25 = vcombine.low %v3644_v42, %v3645_v3 }
 0x830   : > { %3342 = vst [vmem:[%s485_s30] sm:$0xff] %v3340_v25 }
 0x831   : > { %3794 = shalt.err (!%p3791_p4)
}
 0x832   : > { %s3795_s29 = scalar_lea.hbm %s5057_s21, 128  ;;  %s3799_s30 = scalar_lea.hbm %s5115_s14, 256 }
 0x833   : > { %p3796_p5 = scmp.ne.s32.totalorder %s5057_s21, %s3795_s29  ;;  %p3800_p0 = scmp.lt.u32.totalorder %s5057_s21, %s5115_s14 }
 0x834   : > { %p3801_p1 = scmp.lt.u32.totalorder %s3799_s30, %s3795_s29  ;;  %p3803_p6 = scmp.lt.u32.totalorder %s3795_s29, %s5057_s21 }
 0x835   : > { %p3797_p8 = pnand %p3796_p5, %p5162_p11 }
 0x836   : > { %p3802_p3 = por %p3801_p1, %p3800_p0 }
 0x837   : > { %p3798_p9 = pneg %p3797_p8 }
 0x838   : > { %p3804_p12 = por %p3803_p6, %p3802_p3 }
 0x83a   : > { %p3805_p13 = pnand %p3804_p12, %p3798_p9 }
 0x83c   : > { %3808 = shalt.err (!%p3805_p13)
}
 0x83d   : > { %3688 = dma.vmem_to_hbm [thread:$0]  (%p5162_p11), %s5059_s15, 128, %s5057_s21, %s3344_s25  }
 0x83e PF: > { %s5163_s28 = sld [smem:[#allocation9_spill]]  ;;  %p5164_p7 = scmp.ne.s32.totalorder %s5144_s27, 0 }
 0x83f   : > { %p5165_p10 = scmp.ge.s32.totalorder %s3847_s18, 2 }
 0x841   : > { %p3695_p2 = pnand %p5165_p10, %p5164_p7 }
 0x844   : > { %s3370_s9 = sand.u32 1, %s5163_s28  }
 0x845   : > { %s3371_s17 = scalar_lea.sflag [#allocation5], %s3370_s9 }
 0x846   : > { %3830 = dma.done.wait (!%p3695_p2), %s3371_s17, 128  }
 0x847   : > { %3832 = vsyncadd (!%p3695_p2), %s3371_s17, 4294967168  ;;  %s5166_s18 = sld [smem:[#allocation11_spill]]  ;;  %s5167_s19 = sld [smem:[#allocation10_spill]] }
 0x848   : > { %s5168_s17 = sld [smem:[#allocation12_spill]]  ;;  %s5169_s15 = smov %s3839_s16 }
 0x84d   : > { %p29_p4 = scmp.ge.s32.totalorder %s5166_s18, 4   ;;  %s5170_s16 = smov %s5167_s19 }
 0x84f   :  { %31 = sbr.rel (!%p29_p4) target bundleno = 8 (0x8), region = 121 }
 0x856   :  { %3376 = vsyncpa [#allocation4], 1 }
 0x857   :  { %3378 = vsyncpa [#allocation4 + $0x1], 1 }
 0x858   :  { %3379 = vsyncpa [#allocation5], 1 }
 0x859   :  { %3381 = vsyncpa [#allocation5 + $0x1], 1 }

</bundles_post_ra>
